<compile_context>
chip_gen: v7x
topology: tpu7x:2x2x1
jax: 0.10.0
libtpu: 0.0.40
codegen_flags: <defaults>
</compile_context>

<pallas_src>
import math
import functools

import jax
import jax.numpy as jnp
from jax.experimental import pallas as pl
from jax.experimental.pallas import tpu as pltpu


KS = 5                  # unified tap grid (5x5); 1x1 / 3x3 convs are zero-padded into it
PAD = KS // 2
NUM_TAPS = KS * KS
NUM_BRANCHES = 3


def _round_up(x, m):
    return (x + m - 1) // m * m


# --------------------------------- kernel ------------------------------------
def _fused_kernel(x_ref, w_ref, b_ref, o1_ref, o2_ref, o3_ref, qk_ref, *, hidden_pad):
    """One patch per grid step: conv (+ folded q/k proj) -> 3x patch self-attention.

    x_ref : (1, 1, 1, K_pad, L)    lane-dense im2col block (K = taps*Cin, L = patch^2)
    w_ref : (6*hidden_pad, K_pad)  folded weights, row blocks = [q0 k0 q1 k1 q2 k2]
    b_ref : (6*hidden_pad, 1)      folded biases
    o*_ref: (1, 1, 1, L, L)        per-branch attention maps
    qk_ref: (6*hidden_pad, L)      f32 VMEM scratch
    """
    # conv + folded Wq/Wk (+ 1/sqrt(C)): a single K~100-200 MXU matmul into scratch.
    qk_ref[...] = jnp.dot(w_ref[...], x_ref[0, 0, 0],
                          preferred_element_type=jnp.float32) + b_ref[...]

    # Per-branch attention; each branch's output is stored as soon as it is done.
    for r, o_ref in enumerate((o1_ref, o2_ref, o3_ref)):
        q = qk_ref[pl.ds(2 * r * hidden_pad, hidden_pad), :]        # (hp, L) aligned view
        k = qk_ref[pl.ds((2 * r + 1) * hidden_pad, hidden_pad), :]  # (hp, L) aligned view
        # Score scale is already folded into the q weights; padded rows are zero.
        s = jnp.dot(q.T, k, preferred_element_type=jnp.float32)     # (L, L)
        m = jnp.max(s, axis=-1, keepdims=True)
        e = jnp.exp(s - m)
        denom = jnp.sum(e, axis=-1, keepdims=True)
        o_ref[0, 0, 0] = (e * pl.reciprocal(denom, approx=True)).astype(o_ref.dtype)


# ------------------------------ weight folding --------------------------------
def _fold_params(params, hidden, cin, hidden_pad, k_pad):
    """Fold Wq/Wk + biases + 1/sqrt(C) into 5x5-padded conv weights.

    Returns W_big (6*hidden_pad, k_pad) and b_big (6*hidden_pad, 1) with the
    contraction index ordered (tap_dy*5 + tap_dx)*cin + c  (matches the im2col).
    """
    hi = jax.lax.Precision.HIGHEST
    wq, bq = params["query"]
    wk, bk = params["key"]
    scale = 1.0 / math.sqrt(hidden)
    wq2 = wq[:, :, 0, 0] * scale                       # (C, C) with score scale folded
    bq2 = bq * scale
    wk2 = wk[:, :, 0, 0]
    bk2 = bk

    k_dim = NUM_TAPS * cin

    def to_rows(w_eff):                                # (C, Cin, 5, 5) -> (hp, k_pad)
        w = jnp.transpose(w_eff, (0, 2, 3, 1)).reshape(hidden, k_dim)
        return jnp.pad(w, ((0, hidden_pad - hidden), (0, k_pad - k_dim)))

    w_rows, b_rows = [], []
    for name, ks in (("conv1_1x1", 1), ("conv1_3x3", 3), ("conv1_5x5", 5)):
        wconv, bconv = params[name]                    # (C, Cin, ks, ks), (C,)
        off = (KS - ks) // 2
        wpad = jnp.zeros((hidden, cin, KS, KS), wconv.dtype)
        wpad = wpad.at[:, :, off:off + ks, off:off + ks].set(wconv)
        wq_eff = jnp.einsum("pm,mcyx->pcyx", wq2, wpad, precision=hi)
        wk_eff = jnp.einsum("pm,mcyx->pcyx", wk2, wpad, precision=hi)
        bq_eff = wq2 @ bconv + bq2
        bk_eff = wk2 @ bconv + bk2
        for w_eff, b_eff in ((wq_eff, bq_eff), (wk_eff, bk_eff)):
            w_rows.append(to_rows(w_eff))
            b_rows.append(jnp.pad(b_eff, (0, hidden_pad - hidden)))
    w_big = jnp.concatenate(w_rows, axis=0)            # (6*hp, k_pad)
    b_big = jnp.concatenate(b_rows, axis=0)[:, None]   # (6*hp, 1)
    return w_big, b_big


def _pick_vmem_limit_bytes():
    try:
        kind = jax.devices()[0].device_kind.lower()
    except Exception:
        return 48 * 1024 * 1024
    if "v7" in kind or "7x" in kind:                   # 64 MiB physical VMEM
        return 40 * 1024 * 1024
    return 64 * 1024 * 1024                            # v5e / v6e: 128 MiB physical


# --------------------------------- wrapper ------------------------------------
def multi_head_image_self_attention(x_nchw, params, patch_size, *, out_dtype=jnp.float32):
    B, Cin, H, W = x_nchw.shape
    C = params["query"][0].shape[0]
    P = patch_size
    h, w = H // P, W // P
    L = P * P
    hidden_pad = _round_up(C, 8)
    m_pad = 2 * NUM_BRANCHES * hidden_pad
    k_dim = NUM_TAPS * Cin
    k_pad = _round_up(k_dim, 8)

    w_comb, b_comb = _fold_params(params, C, Cin, hidden_pad, k_pad)

    # Lane-dense per-patch im2col: (B, h, w, K_pad, L) with L on the lane axis.
    x = jnp.transpose(x_nchw, (0, 2, 3, 1))                        # NCHW -> NHWC
    xpad = jnp.pad(x, ((0, 0), (PAD, PAD), (PAD, PAD), (0, 0)))
    taps = jnp.stack([xpad[:, dy:dy + H, dx:dx + W, :]             # 25 static shifts
                      for dy in range(KS) for dx in range(KS)], axis=3)   # (B,H,W,T,Cin)
    taps = taps.reshape(B, h, P, w, P, k_dim)
    taps = jnp.transpose(taps, (0, 1, 3, 5, 2, 4)).reshape(B, h, w, k_dim, L)
    if k_pad != k_dim:
        taps = jnp.pad(taps, ((0, 0), (0, 0), (0, 0), (0, k_pad - k_dim), (0, 0)))

    kernel = functools.partial(_fused_kernel, hidden_pad=hidden_pad)
    out_shape = tuple(jax.ShapeDtypeStruct((B, h, w, L, L), out_dtype)
                      for _ in range(NUM_BRANCHES))
    out_spec = pl.BlockSpec((1, 1, 1, L, L), lambda b, i, j: (b, i, j, 0, 0))

    outs = pl.pallas_call(
        kernel,
        out_shape=out_shape,
        grid=(B, h, w),
        in_specs=[
            pl.BlockSpec((1, 1, 1, k_pad, L), lambda b, i, j: (b, i, j, 0, 0)),
            pl.BlockSpec((m_pad, k_pad), lambda b, i, j: (0, 0)),
            pl.BlockSpec((m_pad, 1), lambda b, i, j: (0, 0)),
        ],
        out_specs=tuple(out_spec for _ in range(NUM_BRANCHES)),
        scratch_shapes=[pltpu.VMEM((m_pad, L), jnp.float32)],
        compiler_params=pltpu.CompilerParams(
            dimension_semantics=("parallel", "parallel", "parallel"),
            vmem_limit_bytes=_pick_vmem_limit_bytes()),
    )(taps, w_comb, b_comb)

    # (B, h, w, L, L) -> (B*h*w, L, L), matches torch's '(b h w) p1p2 p1p2'.
    return tuple(o.reshape(B * h * w, L, L) for o in outs)


# ----------------------------- params & reference -----------------------------
def init_params(key, in_channels, hidden_channels):
    ks = jax.random.split(key, 10)

    def conv_init(kw, kb, cout, cin, k):
        fan_in = cin * k * k
        bound = 1.0 / math.sqrt(fan_in)
        w = jax.random.uniform(kw, (cout, cin, k, k), jnp.float32, -bound, bound)
        b = jax.random.uniform(kb, (cout,), jnp.float32, -bound, bound)
        return w, b

    return {
        "conv1_1x1": conv_init(ks[0], ks[1], hidden_channels, in_channels, 1),
        "conv1_3x3": conv_init(ks[2], ks[3], hidden_channels, in_channels, 3),
        "conv1_5x5": conv_init(ks[4], ks[5], hidden_channels, in_channels, 5),
        "query": conv_init(ks[6], ks[7], hidden_channels, hidden_channels, 1),
        "key": conv_init(ks[8], ks[9], hidden_channels, hidden_channels, 1),
    }


def to_patches(y_nhwc, patch):
    # 'b c (h p1) (w p2) -> (b h w) c (p1 p2)'   (channels-last input here)
    B, H, W, C = y_nhwc.shape
    h, w = H // patch, W // patch
    y = y_nhwc.reshape(B, h, patch, w, patch, C)
    y = jnp.transpose(y, (0, 1, 3, 5, 2, 4))
    return y.reshape(B * h * w, C, patch * patch)


def reference(x_nchw, params, patch_size):
    hi = jax.lax.Precision.HIGHEST
    x = jnp.transpose(x_nchw, (0, 2, 3, 1))
    wq, bq = params["query"]
    wk, bk = params["key"]
    wq2, wk2 = wq[:, :, 0, 0], wk[:, :, 0, 0]
    outs = []
    for name in ("conv1_1x1", "conv1_3x3", "conv1_5x5"):
        w, b = params[name]
        y = jax.lax.conv_general_dilated(
            x, jnp.transpose(w, (2, 3, 1, 0)), (1, 1), "SAME",
            dimension_numbers=("NHWC", "HWIO", "NHWC"), precision=hi) + b
        xp = to_patches(y, patch_size)
        q = jnp.einsum("oc,ncl->nol", wq2, xp, precision=hi) + bq[None, :, None]
        kk = jnp.einsum("oc,ncl->nol", wk2, xp, precision=hi) + bk[None, :, None]
        s = jnp.einsum("ncl,ncm->nlm", q, kk, precision=hi) / math.sqrt(xp.shape[1])
        outs.append(jax.nn.softmax(s, axis=-1))
    return tuple(outs)


if __name__ == "__main__":
    B, Cin, H, W = 2, 4, 16, 16
    hidden, patch = 8, 8
    key = jax.random.PRNGKey(0)
    kx, kp = jax.random.split(key)
    x = jax.random.normal(kx, (B, Cin, H, W), jnp.float32)
    params = init_params(kp, Cin, hidden)

    fwd = jax.jit(multi_head_image_self_attention, static_argnums=2)
    outs = jax.block_until_ready(fwd(x, params, patch))
    refs = reference(x, params, patch)
    for o, r in zip(outs, refs):
        assert o.shape == r.shape, (o.shape, r.shape)
        assert jnp.allclose(o, r, atol=2e-3, rtol=2e-3), float(jnp.max(jnp.abs(o - r)))
    print("KERNEL_OK")
</pallas_src>

<mosaic_0001>
module attributes {stable_mosaic.version = 11 : i64} {
  func.func @_fused_kernel(%arg0: i32, %arg1: i32, %arg2: i32, %arg3: memref<1x1x1x104x64xf32, #tpu.memory_space<vmem>>, %arg4: memref<48x104xf32, #tpu.memory_space<vmem>>, %arg5: memref<48x1xf32, #tpu.memory_space<vmem>>, %arg6: memref<1x1x1x64x64xf32, #tpu.memory_space<vmem>>, %arg7: memref<1x1x1x64x64xf32, #tpu.memory_space<vmem>>, %arg8: memref<1x1x1x64x64xf32, #tpu.memory_space<vmem>>, %arg9: memref<48x64xf32, #tpu.memory_space<vmem>>) attributes {dimension_semantics = [#tpu.dimension_semantics<parallel>, #tpu.dimension_semantics<parallel>, #tpu.dimension_semantics<parallel>], iteration_bounds = array<i64: 2, 2, 2>, scalar_prefetch = 0 : i64, scratch_operands = 1 : i64, tpu.core_type = #tpu.core_type<tc>, window_params = [{transform_indices = @transform_0, window_bounds = array<i64: 1, 1, 1, 104, 64>}, {pipeline_mode = #tpu.pipeline_mode<synchronous>, transform_indices = @transform_1, window_bounds = array<i64: 48, 104>}, {pipeline_mode = #tpu.pipeline_mode<synchronous>, transform_indices = @transform_2, window_bounds = array<i64: 48, 1>}, {transform_indices = @transform_3, window_bounds = array<i64: 1, 1, 1, 64, 64>}, {transform_indices = @transform_4, window_bounds = array<i64: 1, 1, 1, 64, 64>}, {transform_indices = @transform_5, window_bounds = array<i64: 1, 1, 1, 64, 64>}]} {
    %c0 = arith.constant 0 : index
    %c0_0 = arith.constant 0 : index
    %0 = vector.load %arg4[%c0, %c0_0] : memref<48x104xf32, #tpu.memory_space<vmem>>, vector<48x104xf32>
    %c0_1 = arith.constant 0 : index
    %c0_2 = arith.constant 0 : index
    %c0_3 = arith.constant 0 : index
    %c0_4 = arith.constant 0 : index
    %c0_5 = arith.constant 0 : index
    %1 = vector.load %arg3[%c0_1, %c0_2, %c0_3, %c0_4, %c0_5] : memref<1x1x1x104x64xf32, #tpu.memory_space<vmem>>, vector<1x1x1x104x64xf32>
    %2 = vector.shape_cast %1 : vector<1x1x1x104x64xf32> to vector<104x64xf32>
    %cst = arith.constant dense<0.000000e+00> : vector<48x64xf32>
    %3 = tpu.matmul %0, %2, %cst {dimension_numbers = #tpu.dot_dimension_numbers<[1], [0], [0], [1], [0, 0, 1, 1], [], []>} : vector<48x104xf32>, vector<104x64xf32>, vector<48x64xf32> -> vector<48x64xf32>
    %c0_6 = arith.constant 0 : index
    %c0_7 = arith.constant 0 : index
    %4 = vector.load %arg5[%c0_6, %c0_7] : memref<48x1xf32, #tpu.memory_space<vmem>>, vector<48x1xf32>
    %5 = vector.broadcast %4 : vector<48x1xf32> to vector<48x64xf32>
    %6 = arith.addf %3, %5 : vector<48x64xf32>
    %c0_8 = arith.constant 0 : index
    %c0_9 = arith.constant 0 : index
    %7 = vector.load %arg9[%c0_8, %c0_9] : memref<48x64xf32, #tpu.memory_space<vmem>>, vector<48x64xf32>
    tpu.vector_store %arg9[%c0_8, %c0_9], %6 {strides = array<i32>} : memref<48x64xf32, #tpu.memory_space<vmem>>, vector<48x64xf32>,
    %c0_10 = arith.constant 0 : index
    %c0_11 = arith.constant 0 : index
    %8 = vector.load %arg9[%c0_10, %c0_11] : memref<48x64xf32, #tpu.memory_space<vmem>>, vector<8x64xf32>
    %c8 = arith.constant 8 : index
    %c0_12 = arith.constant 0 : index
    %9 = vector.load %arg9[%c8, %c0_12] : memref<48x64xf32, #tpu.memory_space<vmem>>, vector<8x64xf32>
    %10 = tpu.transpose %8, [1, 0] : vector<8x64xf32> -> vector<64x8xf32>
    %cst_13 = arith.constant dense<0.000000e+00> : vector<64x64xf32>
    %11 = tpu.matmul %10, %9, %cst_13 {dimension_numbers = #tpu.dot_dimension_numbers<[1], [0], [0], [1], [0, 0, 1, 1], [], []>} : vector<64x8xf32>, vector<8x64xf32>, vector<64x64xf32> -> vector<64x64xf32>
    %cst_14 = arith.constant dense<0xFF800000> : vector<64xf32>
    %12 = vector.multi_reduction <maximumf>, %11, %cst_14 [1] : vector<64x64xf32> to vector<64xf32>
    %13 = vector.shape_cast %12 : vector<64xf32> to vector<64x1xf32>
    %14 = vector.broadcast %13 : vector<64x1xf32> to vector<64x64xf32>
    %15 = arith.subf %11, %14 : vector<64x64xf32>
    %16 = math.exp %15 : vector<64x64xf32>
    %cst_15 = arith.constant dense<0.000000e+00> : vector<64xf32>
    %17 = vector.multi_reduction <add>, %16, %cst_15 [1] : vector<64x64xf32> to vector<64xf32>
    %18 = vector.shape_cast %17 : vector<64xf32> to vector<64x1xf32>
    %19 = tpu.reciprocal %18 {approx = true} : vector<64x1xf32> -> vector<64x1xf32>
    %20 = vector.broadcast %19 : vector<64x1xf32> to vector<64x64xf32>
    %21 = arith.mulf %16, %20 : vector<64x64xf32>
    %c0_16 = arith.constant 0 : index
    %c0_17 = arith.constant 0 : index
    %c0_18 = arith.constant 0 : index
    %c0_19 = arith.constant 0 : index
    %c0_20 = arith.constant 0 : index
    %22 = vector.load %arg6[%c0_16, %c0_17, %c0_18, %c0_19, %c0_20] : memref<1x1x1x64x64xf32, #tpu.memory_space<vmem>>, vector<1x1x1x64x64xf32>
    %23 = vector.shape_cast %22 : vector<1x1x1x64x64xf32> to vector<64x64xf32>
    %24 = vector.shape_cast %21 : vector<64x64xf32> to vector<1x1x1x64x64xf32>
    tpu.vector_store %arg6[%c0_16, %c0_17, %c0_18, %c0_19, %c0_20], %24 {strides = array<i32>} : memref<1x1x1x64x64xf32, #tpu.memory_space<vmem>>, vector<1x1x1x64x64xf32>,
    %c16 = arith.constant 16 : index
    %c0_21 = arith.constant 0 : index
    %25 = vector.load %arg9[%c16, %c0_21] : memref<48x64xf32, #tpu.memory_space<vmem>>, vector<8x64xf32>
    %c24 = arith.constant 24 : index
    %c0_22 = arith.constant 0 : index
    %26 = vector.load %arg9[%c24, %c0_22] : memref<48x64xf32, #tpu.memory_space<vmem>>, vector<8x64xf32>
    %27 = tpu.transpose %25, [1, 0] : vector<8x64xf32> -> vector<64x8xf32>
    %cst_23 = arith.constant dense<0.000000e+00> : vector<64x64xf32>
    %28 = tpu.matmul %27, %26, %cst_23 {dimension_numbers = #tpu.dot_dimension_numbers<[1], [0], [0], [1], [0, 0, 1, 1], [], []>} : vector<64x8xf32>, vector<8x64xf32>, vector<64x64xf32> -> vector<64x64xf32>
    %cst_24 = arith.constant dense<0xFF800000> : vector<64xf32>
    %29 = vector.multi_reduction <maximumf>, %28, %cst_24 [1] : vector<64x64xf32> to vector<64xf32>
    %30 = vector.shape_cast %29 : vector<64xf32> to vector<64x1xf32>
    %31 = vector.broadcast %30 : vector<64x1xf32> to vector<64x64xf32>
    %32 = arith.subf %28, %31 : vector<64x64xf32>
    %33 = math.exp %32 : vector<64x64xf32>
    %cst_25 = arith.constant dense<0.000000e+00> : vector<64xf32>
    %34 = vector.multi_reduction <add>, %33, %cst_25 [1] : vector<64x64xf32> to vector<64xf32>
    %35 = vector.shape_cast %34 : vector<64xf32> to vector<64x1xf32>
    %36 = tpu.reciprocal %35 {approx = true} : vector<64x1xf32> -> vector<64x1xf32>
    %37 = vector.broadcast %36 : vector<64x1xf32> to vector<64x64xf32>
    %38 = arith.mulf %33, %37 : vector<64x64xf32>
    %c0_26 = arith.constant 0 : index
    %c0_27 = arith.constant 0 : index
    %c0_28 = arith.constant 0 : index
    %c0_29 = arith.constant 0 : index
    %c0_30 = arith.constant 0 : index
    %39 = vector.load %arg7[%c0_26, %c0_27, %c0_28, %c0_29, %c0_30] : memref<1x1x1x64x64xf32, #tpu.memory_space<vmem>>, vector<1x1x1x64x64xf32>
    %40 = vector.shape_cast %39 : vector<1x1x1x64x64xf32> to vector<64x64xf32>
    %41 = vector.shape_cast %38 : vector<64x64xf32> to vector<1x1x1x64x64xf32>
    tpu.vector_store %arg7[%c0_26, %c0_27, %c0_28, %c0_29, %c0_30], %41 {strides = array<i32>} : memref<1x1x1x64x64xf32, #tpu.memory_space<vmem>>, vector<1x1x1x64x64xf32>,
    %c32 = arith.constant 32 : index
    %c0_31 = arith.constant 0 : index
    %42 = vector.load %arg9[%c32, %c0_31] : memref<48x64xf32, #tpu.memory_space<vmem>>, vector<8x64xf32>
    %c40 = arith.constant 40 : index
    %c0_32 = arith.constant 0 : index
    %43 = vector.load %arg9[%c40, %c0_32] : memref<48x64xf32, #tpu.memory_space<vmem>>, vector<8x64xf32>
    %44 = tpu.transpose %42, [1, 0] : vector<8x64xf32> -> vector<64x8xf32>
    %cst_33 = arith.constant dense<0.000000e+00> : vector<64x64xf32>
    %45 = tpu.matmul %44, %43, %cst_33 {dimension_numbers = #tpu.dot_dimension_numbers<[1], [0], [0], [1], [0, 0, 1, 1], [], []>} : vector<64x8xf32>, vector<8x64xf32>, vector<64x64xf32> -> vector<64x64xf32>
    %cst_34 = arith.constant dense<0xFF800000> : vector<64xf32>
    %46 = vector.multi_reduction <maximumf>, %45, %cst_34 [1] : vector<64x64xf32> to vector<64xf32>
    %47 = vector.shape_cast %46 : vector<64xf32> to vector<64x1xf32>
    %48 = vector.broadcast %47 : vector<64x1xf32> to vector<64x64xf32>
    %49 = arith.subf %45, %48 : vector<64x64xf32>
    %50 = math.exp %49 : vector<64x64xf32>
    %cst_35 = arith.constant dense<0.000000e+00> : vector<64xf32>
    %51 = vector.multi_reduction <add>, %50, %cst_35 [1] : vector<64x64xf32> to vector<64xf32>
    %52 = vector.shape_cast %51 : vector<64xf32> to vector<64x1xf32>
    %53 = tpu.reciprocal %52 {approx = true} : vector<64x1xf32> -> vector<64x1xf32>
    %54 = vector.broadcast %53 : vector<64x1xf32> to vector<64x64xf32>
    %55 = arith.mulf %50, %54 : vector<64x64xf32>
    %c0_36 = arith.constant 0 : index
    %c0_37 = arith.constant 0 : index
    %c0_38 = arith.constant 0 : index
    %c0_39 = arith.constant 0 : index
    %c0_40 = arith.constant 0 : index
    %56 = vector.load %arg8[%c0_36, %c0_37, %c0_38, %c0_39, %c0_40] : memref<1x1x1x64x64xf32, #tpu.memory_space<vmem>>, vector<1x1x1x64x64xf32>
    %57 = vector.shape_cast %56 : vector<1x1x1x64x64xf32> to vector<64x64xf32>
    %58 = vector.shape_cast %55 : vector<64x64xf32> to vector<1x1x1x64x64xf32>
    tpu.vector_store %arg8[%c0_36, %c0_37, %c0_38, %c0_39, %c0_40], %58 {strides = array<i32>} : memref<1x1x1x64x64xf32, #tpu.memory_space<vmem>>, vector<1x1x1x64x64xf32>,
    return
  }
  func.func @transform_0(%arg0: i32, %arg1: i32, %arg2: i32) -> (i32, i32, i32, i32, i32) {
    %c0_i32 = arith.constant 0 : i32
    %c0_i32_0 = arith.constant 0 : i32
    %c0_i32_1 = arith.constant 0 : i32
    return %arg0, %arg1, %arg2, %c0_i32, %c0_i32_0 : i32, i32, i32, i32, i32
  }
  func.func @transform_1(%arg0: i32, %arg1: i32, %arg2: i32) -> (i32, i32) {
    %c0_i32 = arith.constant 0 : i32
    %c0_i32_0 = arith.constant 0 : i32
    %c0_i32_1 = arith.constant 0 : i32
    return %c0_i32, %c0_i32_0 : i32, i32
  }
  func.func @transform_2(%arg0: i32, %arg1: i32, %arg2: i32) -> (i32, i32) {
    %c0_i32 = arith.constant 0 : i32
    %c0_i32_0 = arith.constant 0 : i32
    %c0_i32_1 = arith.constant 0 : i32
    return %c0_i32, %c0_i32_0 : i32, i32
  }
  func.func @transform_3(%arg0: i32, %arg1: i32, %arg2: i32) -> (i32, i32, i32, i32, i32) {
    %c0_i32 = arith.constant 0 : i32
    %c0_i32_0 = arith.constant 0 : i32
    %c0_i32_1 = arith.constant 0 : i32
    return %arg0, %arg1, %arg2, %c0_i32, %c0_i32_0 : i32, i32, i32, i32, i32
  }
  func.func @transform_4(%arg0: i32, %arg1: i32, %arg2: i32) -> (i32, i32, i32, i32, i32) {
    %c0_i32 = arith.constant 0 : i32
    %c0_i32_0 = arith.constant 0 : i32
    %c0_i32_1 = arith.constant 0 : i32
    return %arg0, %arg1, %arg2, %c0_i32, %c0_i32_0 : i32, i32, i32, i32, i32
  }
  func.func @transform_5(%arg0: i32, %arg1: i32, %arg2: i32) -> (i32, i32, i32, i32, i32) {
    %c0_i32 = arith.constant 0 : i32
    %c0_i32_0 = arith.constant 0 : i32
    %c0_i32_1 = arith.constant 0 : i32
    return %arg0, %arg1, %arg2, %c0_i32, %c0_i32_0 : i32, i32, i32, i32, i32
  }
}

</mosaic_0001>

<bundles_post_ra>
// kernel: multi_head_image_self_attention.1
= control target key start
LH: loop header
LB: loop body
LE: loop exit
PB: predicated region body
PF: predicated region fallthrough
CT: control target
= control target key end

     0   :  { %s3012_s0 = inlined_call_operand.hbm [shape: f32[2,2,2,104,64], index: 0, kind: input, shape index: {}]   ;;  %s3013_s1 = inlined_call_operand.hbm [shape: f32[48,104], index: 1, kind: input, shape index: {}]   ;;  %s3014_s2 = inlined_call_operand.hbm [shape: f32[48,1], index: 2, kind: input, shape index: {}]   ;;  %s3015_s3 = inlined_call_operand.hbm [shape: f32[2,2,2,64,64], index: 3, kind: output, shape index: {0}]   ;;  %s3016_s4 = inlined_call_operand.hbm [shape: f32[2,2,2,64,64], index: 4, kind: output, shape index: {1}]   ;;  %s3017_s5 = inlined_call_operand.hbm [shape: f32[2,2,2,64,64], index: 5, kind: output, shape index: {2}]  }
   0x1   :  { %3036 = sst [smem:[#allocation26_spill]] %s3013_s1 }
   0x2   :  { %3037 = sst [smem:[#allocation27_spill]] %s3014_s2 }
   0x3   :  { %3038 = sst [smem:[#allocation28_spill]] %s3015_s3 }
   0x4   :  { %3039 = sst [smem:[#allocation29_spill]] %s3016_s4 }
   0x5   :  { %3040 = sst [smem:[#allocation30_spill]] %s3017_s5 }
   0x6   :  { %11 = vsyncpa [#allocation4], 0 }
   0x7   :  { %13 = vsyncpa [#allocation4 + $0x1], 0 }
   0x8   :  { %14 = vsyncpa [#allocation7], 0 }
   0x9   :  { %15 = vsyncpa [#allocation5], 0 }
   0xa   :  { %17 = vsyncpa [#allocation5 + $0x1], 0 }
   0xb   :  { %18 = vsyncpa [#allocation11], 0 }
   0xc   :  { %20 = vsyncpa [#allocation11 + $0x1], 0  ;;  %s2291_s18 = smov 0   ;;  %s2293_s19 = smov 0  }
   0xd   :  { %s2295_s20 = smov 0   ;;  %s2297_s21 = smov 0  }
   0xe   :  { %s2299_s22 = smov 0   ;;  %s2301_s23 = smov 0  }
   0xf   :  { %s2303_s24 = smov 0   ;;  %s2305_s25 = smov 0  }
  0x10   :  { %s2307_s26 = smov 0   ;;  %s2309_s27 = smov 0  }
  0x11 LB: > { %3041 = sst [smem:[#allocation17_spill]] %s2212_s18  ;;  %s2342_s28 = sadd.s32 4294967295, %s2248_s27   ;;  %s2248_s27 = sphi %s2309_s27, %s26_s27   ;;  %s2244_s26 = sphi %s2307_s26, %s3087_s26   ;;  %s2240_s25 = sphi %s2305_s25, %s3086_s25   ;;  %s2236_s24 = sphi %s2303_s24, %s3079_s24   ;;  %s2232_s23 = sphi %s2301_s23, %s3085_s23   ;;  %s2228_s22 = sphi %s2299_s22, %s3084_s22   ;;  %s2224_s21 = sphi %s2297_s21, %s3078_s21   ;;  %s2220_s20 = sphi %s2295_s20, %s3083_s20   ;;  %s2216_s19 = sphi %s2293_s19, %s3082_s19   ;;  %s2212_s18 = sphi %s2291_s18, %s3081_s18  }
  0x12   : > { %3042 = sst [smem:[#allocation18_spill]] %s2228_s22  ;;  %s3018_s29 = sadd.s32 4294967294, %s2248_s27  }
  0x13   : > { %3043 = sst [smem:[#allocation19_spill]] %s2232_s23  ;;  %p69_p0 = scmp.ne.s32.totalorder %s2216_s19, %s2212_s18 }
  0x14   : > { %3044 = sst [smem:[#allocation20_spill]] %s2236_s24  ;;  %p3019_p1 = scmp.eq.s32.totalorder %s2342_s28, 0 }
  0x15   : > { %3045 = sst [smem:[#allocation21_spill]] %s2248_s27  ;;  %p145_p3 = scmp.eq.s32.totalorder %s3018_s29, 7 }
  0x16   : > { %p2353_p4 = por %p3019_p1, %p69_p0  ;;  %p1543_p5 = scmp.ge.s32.totalorder %s2248_s27, 1 }
  0x17   : > { %p2358_p6 = por %p145_p3, %p69_p0  ;;  %p212_p7 = scmp.lt.s32.totalorder %s2248_s27, 9 }
  0x18   : > { %s3046_s30 = scalar_select %p2353_p4, 1, 0 }
  0x19   : > { %s3047_s6 = scalar_select %p2358_p6, 1, 0 }
  0x1a   : > { %p2363_p8 = pnand %p1543_p5, %p212_p7  ;;  %s2250_s8 = smov [#allocation6]  }
  0x1b   : > { %3048 = sst [smem:[#allocation22_spill]] %s3047_s6  ;;  %s224_s9 = sshll.u32 %s2250_s8, 4  ;;  %s225_s9 = int_to_ptr.vmem [resolvable:$true] %s224_s9 }
  0x1c   : > { %s3049_s7 = scalar_select %p2363_p8, 1, 0 }
  0x1d   : > { %p1771_p9 = pneg %p2363_p8  ;;  %s2251_s11 = smov [#allocation8]  }
  0x1e   : > { %s237_s12 = sshll.u32 %s2251_s11, 4  ;;  %s3051_s1 = sld [smem:[#allocation26_spill]]  ;;  %s2375_s12 = int_to_ptr.vmem [resolvable:$true] %s237_s12 }
  0x1f   : > { %p2371_p10 = pnand %p1771_p9, %p3019_p1 }
  0x21   : > { %p1986_p12 = pneg %p2371_p10 }
  0x24   : > { %s1984_s15 = scalar_lea.hbm %s3051_s1, 768 }
  0x25   : > { %p1985_p11 = scmp.ne.s32.totalorder %s3051_s1, %s1984_s15  ;;  %p1991_p3 = scmp.lt.u32.totalorder %s1984_s15, %s3051_s1 }
  0x27   : > { %p1987_p13 = pnand %p1986_p12, %p1985_p11 }
  0x29   : > { %p1988_p0 = pneg %p1987_p13 }
  0x2b   : > { %p1993_p5 = pnand %p1991_p3, %p1988_p0 }
  0x2d   : > { %1996 = shalt.err (!%p1993_p5)
}
  0x2e   : > { %s1997_s11 = scalar_lea.vmem %s225_s9, 768  ;;  %p2005_p2 = scmp.lt.s32.totalorder %s225_s9, %s225_s9 }
  0x2f   : > { %p1998_p7 = scmp.ne.s32.totalorder %s225_s9, %s1997_s11  ;;  %p2006_p6 = scmp.lt.s32.totalorder %s1997_s11, %s1997_s11 }
  0x31   : > { %p2000_p9 = pnand %p1998_p7, %p1986_p12  ;;  %p2007_p4 = por %p2006_p6, %p2005_p2 }
  0x33   : > { %p2001_p1 = pneg %p2000_p9 }
  0x35   : > { %p2008_p8 = pnand %p2007_p4, %p2001_p1 }
  0x37   : > { %2011 = shalt.err (!%p2008_p8)
}
  0x38   : > { %s3025_s13 = smov 128   ;;  %s3026_s14 = smov 8  }
  0x39   : > { %1774 = dma.hbm_to_vmem [thread:$0]  (!%p2371_p10), %s3051_s1, 768, %s225_s9, [#allocation7], %s3025_s13, %s3025_s13, %s3026_s14  }
  0x3a   : > { %s3052_s2 = sld [smem:[#allocation27_spill]] }
  0x40   : > { %s2012_s8 = scalar_lea.hbm %s3052_s2, 768 }
  0x41   : > { %p2013_p1 = scmp.ne.s32.totalorder %s3052_s2, %s2012_s8  ;;  %p2019_p6 = scmp.lt.u32.totalorder %s2012_s8, %s3052_s2 }
  0x43   : > { %p2015_p2 = pnand %p2013_p1, %p1986_p12 }
  0x45   : > { %p2016_p4 = pneg %p2015_p2 }
  0x47   : > { %p2021_p8 = pnand %p2019_p6, %p2016_p4 }
  0x49   : > { %2024 = shalt.err (!%p2021_p8)
}
  0x4a   : > { %s2025_s9 = scalar_lea.vmem %s2375_s12, 768  ;;  %p2033_p3 = scmp.lt.s32.totalorder %s2375_s12, %s2375_s12 }
  0x4b   : > { %p2026_p11 = scmp.ne.s32.totalorder %s2375_s12, %s2025_s9  ;;  %p2034_p5 = scmp.lt.s32.totalorder %s2025_s9, %s2025_s9 }
  0x4d   : > { %p2028_p13 = pnand %p2026_p11, %p1986_p12  ;;  %p2035_p7 = por %p2034_p5, %p2033_p3 }
  0x4f   : > { %p2029_p0 = pneg %p2028_p13 }
  0x51   : > { %p2036_p9 = pnand %p2035_p7, %p2029_p0 }
  0x53   : > { %2039 = shalt.err (!%p2036_p9)
}
  0x54   : > { %1777 = dma.hbm_to_vmem [thread:$0]  (!%p2371_p10), %s3052_s2, 768, %s2375_s12, [#allocation7], %s3025_s13, %s3025_s13, %s3026_s14  }
  0x55   : > { %s38_s6 = sadd.s32 1, %s2236_s24  ;;  %s41_s10 = sadd.s32 1, %s2240_s25 }
  0x56   : > { %p39_p12 = scmp.ge.s32.totalorder %s38_s6, 2  ;;  %s45_s29 = sadd.s32 1, %s2244_s26 }
  0x57   : > { %p63_p1 = scmp.ne.s32.totalorder %s2220_s20, %s2216_s19  ;;  %p64_p2 = scmp.eq.s32.totalorder %s2248_s27, 0 }
  0x58   : > { %s3089_s6 = smov (%p39_p12, %s38_s6), 0  ;;  %s3091_s10 = smov (!%p39_p12, %s41_s10), %s2240_s25 }
  0x59   : > { %3053 = sst [smem:[#allocation23_spill]] %s3089_s6  ;;  %s52_s16 = ssub.s32 %s2236_s24, %s3089_s6 }
  0x5a   : > { %p43_p4 = scmp.ge.s32.totalorder %s3091_s10, 2  ;;  %p3054_p10 = scmp.eq.s32.totalorder %s2342_s28, 7 }
  0x5b   : > { %p65_p8 = por %p64_p2, %p63_p1  ;;  %p1794_p11 = scmp.lt.s32.totalorder %s2248_s27, 8 }
  0x5c   : > { %p2444_p6 = por %p3054_p10, %p63_p1  ;;  %s3093_s10 = smov (%p43_p4, %s3091_s10), 0 }
  0x5d   : > { %3057 = sst [smem:[#allocation25_spill]] %s3093_s10  ;;  %s3095_s29 = smov (!%p43_p4, %s45_s29), %s2244_s26 }
  0x5e   : > { %s3055_s12 = scalar_select %p2444_p6, 1, 0 }
  0x5f   : > { %s50_s17 = ssub.s32 %s2240_s25, %s3093_s10  ;;  %s251_s8 = sand.u32 1, %s2220_s20  }
  0x60   : > { %3056 = sst [smem:[#allocation24_spill]] %s3055_s12  ;;  %p47_p13 = scmp.ge.s32.totalorder %s3095_s29, 2 }
  0x61   : > { %s1750_s11 = smul.u32 104, %s251_s8  ;;  %p2455_p0 = pnand %p1794_p11, %p65_p8 }
  0x62   : > { %s3097_s29 = smov (%p47_p13, %s3095_s29), 0  ;;  %s1751_s5 = smul.u32 13, %s2236_s24 }
  0x63   : > { %s49_s18 = ssub.s32 %s2244_s26, %s3097_s29  ;;  %s1752_s13 = smul.u32 26, %s2240_s25 }
  0x64   : > { %s51_s14 = sor.u32 %s50_s17, %s49_s18  ;;  %s1753_s15 = smul.u32 52, %s2244_s26 }
  0x65   : > { %s53_s1 = sor.u32 %s52_s16, %s51_s14  ;;  %s261_s2 = sadd.s32 %s1752_s13, %s1751_s5 }
  0x66   : > { %p54_p3 = scmp.eq.s32.totalorder %s53_s1, 0  ;;  %s263_s10 = sadd.s32 %s1753_s15, %s261_s2 }
  0x67   : > { %s1547_s6 = sshll.u32 %s263_s10, 7  ;;  %s255_s27 = scalar_lea.vmem [#allocation3], %s1750_s11 }
  0x68   : > { %s266_s4 = sshll.u32 %s255_s27, 4  ;;  %s3059_s3 = sadd.s32 1, %s2220_s20  ;;  %s2476_s4 = int_to_ptr.vmem [resolvable:$true] %s266_s4 }
  0x69   : > { %s2469_s12 = scalar_select %p54_p3, %s2220_s20, %s3059_s3  }
  0x6a   : > { %s2474_s24 = scalar_lea.hbm %s3012_s0, %s1547_s6  ;;  %s2478_s13 = scalar_lea.sflag [#allocation4], %s251_s8 }
  0x6b   : > { %s2040_s1 = scalar_lea.hbm %s2474_s24, 1664  ;;  %p2042_p7 = pneg %p2455_p0 }
  0x6c   : > { %p2041_p5 = scmp.ne.s32.totalorder %s2474_s24, %s2040_s1  ;;  %s2045_s22 = scalar_lea.hbm %s3012_s0, 13312 }
  0x6d   : > { %p2046_p1 = scmp.lt.u32.totalorder %s2474_s24, %s3012_s0  ;;  %p2047_p2 = scmp.lt.u32.totalorder %s2045_s22, %s2040_s1 }
  0x6e   : > { %p2043_p9 = pnand %p2042_p7, %p2041_p5  ;;  %p2049_p10 = scmp.lt.u32.totalorder %s2040_s1, %s2474_s24 }
  0x6f   : > { %p2048_p4 = por %p2047_p2, %p2046_p1 }
  0x70   : > { %p2044_p12 = pneg %p2043_p9 }
  0x71   : > { %p2050_p8 = por %p2049_p10, %p2048_p4 }
  0x73   : > { %p2051_p11 = pnand %p2050_p8, %p2044_p12 }
  0x75   : > { %2054 = shalt.err (!%p2051_p11)
}
  0x76   : > { %s2055_s14 = scalar_lea.vmem %s2476_s4, 1664  ;;  %s2254_s6 = smov [#allocation3]  }
  0x77   : > { %p2056_p13 = scmp.ne.s32.totalorder %s2476_s4, %s2055_s14  ;;  %s2060_s10 = sshll.u32 %s2254_s6, 4  ;;  %s2061_s10 = int_to_ptr.vmem [resolvable:$false] %s2060_s10 }
  0x78   : > { %s2062_s15 = scalar_lea.vmem %s2061_s10, 3328  ;;  %p2063_p9 = scmp.lt.s32.totalorder %s2476_s4, %s2061_s10 }
  0x79   : > { %p2058_p3 = pnand %p2056_p13, %p2042_p7  ;;  %p2064_p1 = scmp.lt.s32.totalorder %s2062_s15, %s2055_s14 }
  0x7b   : > { %p2059_p5 = pneg %p2058_p3  ;;  %p2065_p2 = por %p2064_p1, %p2063_p9 }
  0x7d   : > { %p2066_p4 = pnand %p2065_p2, %p2059_p5 }
  0x7f   : > { %2069 = shalt.err (!%p2066_p4)
}
  0x80   : > { %s3060_s16 = smov 8   ;;  %s3061_s17 = smov 128  }
  0x81   : > { %1781 = dma.hbm_to_vmem [thread:$0]  (!%p2455_p0), %s2474_s24, 1664, %s2476_s4, %s2478_s13, %s3061_s17, %s3061_s17, %s3060_s16  }
  0x82   : > { %p3062_p7 = scmp.ne.s32.totalorder %s3049_s7, 0 }
  0x83   : > { %s2512_s8 = sand.u32 (!%p3062_p7), 1, %s2216_s19   ;;  %p3063_p12 = scmp.ne.s32.totalorder (!%p3062_p7), %s3046_s30, 0 }
  0x84   : > { %278 = sbr.rel (%p3062_p7) target bundleno = 1156 (0x484), region = 32  ;;  %s281_s5 = scalar_lea.sflag (!%p3062_p7), [#allocation4], %s2512_s8 }
  0x85   : > { %s1754_s11 = smul.u32 (!%p3062_p7), 104, %s2512_s8 }
  0x87   : > { %s2516_s18 = scalar_lea.vmem (!%p3062_p7), [#allocation3], %s1754_s11 }
  0x8b   : > { %2195 = dma.done.wait (%p3063_p12), %s281_s5, 1664  }
  0x8c   : > { %2197 = vsyncadd (%p3063_p12), %s281_s5, 4294965632  ;;  %p3064_p0 = scmp.eq.s32.totalorder %s2342_s28, 0 }
  0x8e   : > { %2199 = dma.done.wait (%p3064_p0), [#allocation7], 1536   ;;  %p3065_p10 = pmov %p3064_p0 }
  0x8f   : > { %v2255_v0 = vmov 0   ;;  %v335_v1 = vld [vmem:[%s2516_s18] sm:$0xff]  ;;  %v336_v2 = vld [vmem:[%s2516_s18 + $0x8] sm:$0xff]  ;;  %v337_v3 = vld [vmem:[%s2516_s18 + $0x10] sm:$0xff]  ;;  %vm384_vm0 = vcmask 850944   ;;  %vm498_vm1 = vcmask 523264  }
  0x90   : > { %2201 = vsyncadd (%p3065_p10), [#allocation7], 4294965760  ;;  %1886 = vset.pattern.permute.xlu0 %v2255_v0  ;;  %1887 = vset.pattern.permute.xlu1 %v2255_v0  ;;  %v1724_v4 = vpack.c.bf16 %v336_v2, %v335_v1  ;;  %v338_v5 = vld [vmem:[%s2516_s18 + $0x18] sm:$0xff]  ;;  %v339_v7 = vld [vmem:[%s2516_s18 + $0x20] sm:$0xff]  ;;  %vm539_vm2 = vcmask 64512   ;;  %s2792_s4 = sshll.u32 %s2512_s8, 6 }
  0x91   : > { %v1728_v6 = vpack.c.bf16 %v338_v5, %v337_v3  ;;  %v340_v8 = vld [vmem:[%s2516_s18 + $0x28] sm:$0xff]  ;;  %v341_v11 = vld [vmem:[%s2516_s18 + $0x30] sm:$0xff]  ;;  %v342_v12 = vld [vmem:[%s2516_s18 + $0x38] sm:$0xff]  ;;  %s2797_s24 = scalar_lea.vmem [#allocation9], %s2792_s4  ;;  %s3066_s30 = sld [smem:[#allocation18_spill]] }
  0x92   : > { %1725 = vmatprep.subr.bf16.mxu0 %v1724_v4  ;;  %v329_v9 = vld [vmem:[#allocation6] sm:$0xff]  ;;  %v1732_v10 = vpack.c.bf16 %v340_v8, %v339_v7  ;;  %v348_v13 = vld [vmem:[#allocation8] sm:$0xff]  ;;  %v349_v16 = vld [vmem:[#allocation8 + $0x8] sm:$0xff]  ;;  %v1736_v17 = vpack.c.bf16 %v342_v12, %v341_v11  ;;  %s3067_s7 = sld [smem:[#allocation19_spill]]  ;;  %s1587_s9 = sshll.u32 %s2224_s21, 3 }
  0x93   : > { %1727 = vmatpush3.bf16.msra.mxu0 %v1724_v4  ;;  %1673 = vmatprep.mubr.msk.f32.mxu0 %vm384_vm0, %v329_v9  ;;  %v352_v14 = vld [vmem:[#allocation8 + $0x20] sm:$0xff]  ;;  %v350_v15 = vld [vmem:[#allocation8 + $0x10] sm:$0xff]  ;;  %v351_v20 = vld [vmem:[#allocation8 + $0x18] sm:$0xff]  ;;  %s1311_s22 = sshll.u32 %s2797_s24, 4  ;;  %s3069_s6 = sld [smem:[#allocation28_spill]]  ;;  %s2829_s22 = int_to_ptr.vmem [resolvable:$true] %s1311_s22 }
  0x94   : > { %1729 = vmatprep.subr.bf16.mxu0 %v1728_v6  ;;  %356 = vperm.xlu0 %1886, %v348_v13   ;;  %v343_v18 = vld [vmem:[%s2516_s18 + $0x40] sm:$0xff]  ;;  %v344_v19 = vld [vmem:[%s2516_s18 + $0x48] sm:$0xff]  ;;  %v345_v23 = vld [vmem:[%s2516_s18 + $0x50] sm:$0xff]  ;;  %s1284_s15 = scalar_lea.sflag [#allocation5], %s2512_s8  ;;  %s2070_s16 = scalar_lea.vmem %s2829_s22, 1024 }
  0x95   : > { %376 = vperm.xlu1 %1887, %v352_v14   ;;  %v353_v21 = vld [vmem:[#allocation8 + $0x28] sm:$0xff]  ;;  %v1740_v22 = vpack.c.bf16 %v344_v19, %v343_v18  ;;  %v346_v24 = vld [vmem:[%s2516_s18 + $0x58] sm:$0xff]  ;;  %v333_v30 = vld [vmem:[#allocation6 + $0x20] sm:$0xff]  ;;  %p2071_p8 = scmp.ne.s32.totalorder %s2829_s22, %s2070_s16  ;;  %s2256_s17 = smov [#allocation9]  }
  0x96   : > { %v1744_v25 = vpack.c.bf16 %v346_v24, %v345_v23  ;;  %v347_v26 = vld [vmem:[%s2516_s18 + $0x60] sm:$0xff]  ;;  %v330_v27 = vld [vmem:[#allocation6 + $0x8] sm:$0xff]  ;;  %s2074_s11 = sshll.u32 %s2256_s17, 4  ;;  %s2075_s11 = int_to_ptr.vmem [resolvable:$false] %s2074_s11 }
  0x97   : > { %1731 = vmatpush3.bf16.msra.mxu0 %v1728_v6  ;;  %v331_v28 = vld [vmem:[#allocation6 + $0x10] sm:$0xff]  ;;  %v332_v29 = vld [vmem:[#allocation6 + $0x18] sm:$0xff]  ;;  %v334_v31 = vld [vmem:[#allocation6 + $0x28] sm:$0xff]  ;;  %s1588_s13 = sshll.u32 %s3066_s30, 4  ;;  %p2072_p11 = pnand %p2071_p8, %p2444_p6 }
  0x98   : > { %1733 = vmatprep.subr.bf16.mxu0 %v1732_v10  ;;  %366 = vperm.xlu0 %1886, %v350_v15   ;;  %s1306_s1 = sadd.s32 %s1588_s13, %s1587_s9  ;;  %s1589_s2 = sshll.u32 %s3067_s7, 5 }
  0x99   : > { %361 = vperm.xlu1 %1887, %v349_v16   ;;  %s1308_s21 = sadd.s32 %s1589_s2, %s1306_s1  ;;  %p2073_p13 = pneg %p2072_p11 }
  0x9a   : > { %s2818_s3 = sshll.u32 %s1308_s21, 7  ;;  %s2076_s5 = scalar_lea.vmem %s2075_s11, 2048 }
  0x9b   : > { %1735 = vmatpush3.bf16.msra.mxu0 %v1732_v10  ;;  %s2827_s10 = scalar_lea.hbm %s3069_s6, %s2818_s3  ;;  %p2077_p3 = scmp.lt.s32.totalorder %s2829_s22, %s2075_s11 }
  0x9c   : > { %1737 = vmatprep.subr.bf16.mxu0 %v1736_v17  ;;  %371 = vperm.xlu0 %1886, %v351_v20   ;;  %p2078_p5 = scmp.lt.s32.totalorder %s2076_s5, %s2070_s16 }
  0x9d   : > { %381 = vperm.xlu1 %1887, %v353_v21  }
  0x9e   : > { %p2079_p9 = por %p2078_p5, %p2077_p3 }
  0x9f   : > { %1739 = vmatpush3.bf16.msra.mxu0 %v1736_v17 }
  0xa0   : > { %1741 = vmatprep.subr.bf16.mxu0 %v1740_v22  ;;  %p2080_p1 = pnand %p2079_p9, %p2073_p13 }
  0xa3   : > { %1743 = vmatpush3.bf16.msra.mxu0 %v1740_v22 }
  0xa4   : > { %1745 = vmatprep.subr.bf16.mxu0 %v1744_v25 }
  0xa7   : > { %1747 = vmatpush3.bf16.msra.mxu0 %v1744_v25 }
  0xa8   : > { %1671 = vmatprep.subr.mxu0 %v347_v26 }
  0xab   : > { %1672 = vmatpush3.msra.mxu0 %v347_v26 }
  0xac   : > { %1674 = vmatmul.mubr.msk.f32.vlgmr.msra.gmra.mrb[0].mxu0 %vm384_vm0, %v330_v27 }
  0xad   : > { %1676 = vmatprep.mubr.msk.f32.mxu0 %vm384_vm0, %v331_v28 }
  0xb0   : > { %1677 = vmatmul.mubr.msk.f32.gmra.mrb[2].mxu0 %vm384_vm0, %v332_v29 }
  0xb1   : > { %1679 = vmatprep.mubr.msk.f32.mxu0 %vm384_vm0, %v333_v30 }
  0xb4   : > { %1680 = vmatmul.mubr.msk.f32.gmra.mrb[4].mxu0 %vm384_vm0, %v334_v31 }
 0x113   : > { %v357_v32 = vpop.permute.xlu0 %356 }
 0x114   : > { %v377_v33 = vpop.permute.xlu1 %376 }
 0x117   : > { %v367_v34 = vpop.permute.xlu0 %366 }
 0x118   : > { %v362_v35 = vpop.permute.xlu1 %361 }
 0x11b   : > { %v372_v40 = vpop.permute.xlu0 %371 }
 0x11c   : > { %v382_v45 = vpop.permute.xlu1 %381 }
 0x17f   : > { %v1675_v36 = vpop.f32.mrb[0].mxu0 }
 0x180   : > { %v475_v37 = vadd.f32 %v1675_v36, %v362_v35  ;;  %v469_v38 = vpop.f32.mrb[1].mxu0 }
 0x181   : > { %v470_v39 = vadd.f32 %v469_v38, %v357_v32 }
 0x182   : > { %500 = vst.msk [vmem:[#allocation2 + $0x8] sm:$0xff] %vm498_vm1, %v475_v37 }
 0x183   : > { %499 = vst.msk [vmem:[#allocation2] sm:$0xff] %vm498_vm1, %v470_v39  ;;  %v1678_v41 = vpop.f32.mrb[2].mxu0 }
 0x184   : > { %v485_v42 = vadd.f32 %v1678_v41, %v372_v40  ;;  %v479_v43 = vpop.f32.mrb[3].mxu0 }
 0x185   : > { %v480_v44 = vadd.f32 %v479_v43, %v367_v34 }
 0x186   : > { %502 = vst.msk [vmem:[#allocation2 + $0x18] sm:$0xff] %vm498_vm1, %v485_v42 }
 0x187   : > { %501 = vst.msk [vmem:[#allocation2 + $0x10] sm:$0xff] %vm498_vm1, %v480_v44  ;;  %v1681_v46 = vpop.f32.mrb[4].mxu0 }
 0x188   : > { %v489_v47 = vpop.f32.mrb[5].mxu0  ;;  %v495_v48 = vadd.f32 %v1681_v46, %v382_v45 }
 0x189   : > { %v506_v49 = vld [vmem:[#allocation2 + $0x8] sm:$0xff]  ;;  %v490_v50 = vadd.f32 %v489_v47, %v377_v33 }
 0x18a   : > { %1682 = vmatprep.subr.mxu0 %v506_v49  ;;  %1748 = vmatprep.subr.mxu1 %v506_v49  ;;  %v505_v51 = vld [vmem:[#allocation2] sm:$0xff]  ;;  %504 = vst.msk [vmem:[#allocation2 + $0x28] sm:$0xff] %vm498_vm1, %v495_v48 }
 0x18b   : > { %1683 = vmatpush3.msra.mxu0 %v506_v49  ;;  %1749 = vmatpush3.msra.mxu1 %v506_v49  ;;  %503 = vst.msk [vmem:[#allocation2 + $0x20] sm:$0xff] %vm498_vm1, %v490_v50 }
 0x18c   : > { %507 = vxpose.xlu0.b32.start.end [1/1] (short) (narrow) %v505_v51, 64 }
 0x18d   : > { %v766_v52 = vld [vmem:[#allocation2 + $0x18] sm:$0xff] }
 0x18e   : > { %1696 = vmatprep.subr.mxu1 %v766_v52  ;;  %v765_v53 = vld [vmem:[#allocation2 + $0x10] sm:$0xff] }
 0x18f   : > { %767 = vxpose.xlu1.b32.start.end [1/1] (short) (narrow) %v765_v53, 64 }
 0x191   : > { %v1025_v62 = vld [vmem:[#allocation2 + $0x28] sm:$0xff] }
 0x192   : > { %v1024_v54 = vld [vmem:[#allocation2 + $0x20] sm:$0xff] }
 0x1a9   : > { %1026 = vxpose.xlu0.b32.start.end [1/1] (short) (narrow) %v1024_v54, 64 }
 0x20c   : > { %v523_v55 = vpop.trf.xlu0 }
 0x20d   : > { %1684 = vmatprep.mubr.msk.f32.mxu0 %vm539_vm2, %v523_v55 }
 0x20f   : > { %v783_v56 = vpop.trf.xlu1 }
 0x210   : > { %v524_v57 = vpop.trf.xlu0 }
 0x211   : > { %1685 = vmatmul.mubr.msk.f32.vlgmr.msra.gmra.mrb[6].mxu0 %vm539_vm2, %v524_v57 }
 0x213   : > { %v784_v58 = vpop.trf.xlu1 }
 0x214   : > { %v525_v59 = vpop.trf.xlu0 }
 0x215   : > { %1687 = vmatprep.mubr.msk.f32.mxu1 %vm539_vm2, %v525_v59 }
 0x217   : > { %v785_v61 = vpop.trf.xlu1 }
 0x218   : > { %v526_v60 = vpop.trf.xlu0 }
 0x219   : > { %1688 = vmatmul.mubr.msk.f32.vlgmr.msra.gmra.mrb[0].mxu1 %vm539_vm2, %v526_v60 }
 0x21a   : > { %1697 = vmatpush3.msra.mxu1 %v766_v52 }
 0x21b   : > { %1710 = vmatprep.subr.mxu1 %v1025_v62  ;;  %v786_v0 = vpop.trf.xlu1 }
 0x21c   : > { %v527_v63 = vpop.trf.xlu0 }
 0x21d   : > { %1690 = vmatprep.mubr.msk.f32.mxu1 %vm539_vm2, %v527_v63 }
 0x21f   : > { %v787_v3 = vpop.trf.xlu1 }
 0x220   : > { %v528_v1 = vpop.trf.xlu0 }
 0x221   : > { %1691 = vmatmul.mubr.msk.f32.gmra.mrb[2].mxu1 %vm539_vm2, %v528_v1 }
 0x223   : > { %v788_v5 = vpop.trf.xlu1 }
 0x224   : > { %v529_v2 = vpop.trf.xlu0 }
 0x225   : > { %1693 = vmatprep.mubr.msk.f32.mxu1 %vm539_vm2, %v529_v2 }
 0x227   : > { %v789_v8 = vpop.trf.xlu1 }
 0x228   : > { %v530_v4 = vpop.trf.xlu0 }
 0x229   : > { %1694 = vmatmul.mubr.msk.f32.gmra.mrb[4].mxu1 %vm539_vm2, %v530_v4 }
 0x22a   : > { %1698 = vmatprep.mubr.msk.f32.mxu1 %vm539_vm2, %v783_v56 }
 0x22b   : > { %v790_v10 = vpop.trf.xlu1 }
 0x22c   : > { %v1042_v6 = vpop.trf.xlu0 }
 0x22d   : > { %1699 = vmatmul.mubr.msk.f32.vlgmr.msra.gmra.mrb[6].mxu1 %vm539_vm2, %v784_v58 }
 0x22e   : > { %1711 = vmatpush3.msra.mxu1 %v1025_v62  ;;  %1701 = vmatprep.mubr.msk.f32.mxu1 %vm539_vm2, %v785_v61 }
 0x230   : > { %v1043_v7 = vpop.trf.xlu0 }
 0x231   : > { %1702 = vmatmul.mubr.msk.f32.gmra.mrb[8].mxu1 %vm539_vm2, %v786_v0 }
 0x232   : > { %1704 = vmatprep.mubr.msk.f32.mxu1 %vm539_vm2, %v787_v3 }
 0x234   : > { %v1044_v9 = vpop.trf.xlu0 }
 0x235   : > { %1705 = vmatmul.mubr.msk.f32.gmra.mrb[10].mxu1 %vm539_vm2, %v788_v5 }
 0x236   : > { %1707 = vmatprep.mubr.msk.f32.mxu1 %vm539_vm2, %v789_v8 }
 0x238   : > { %v1045_v11 = vpop.trf.xlu0 }
 0x239   : > { %1708 = vmatmul.mubr.msk.f32.gmra.mrb[12].mxu1 %vm539_vm2, %v790_v10 }
 0x23a   : > { %1712 = vmatprep.mubr.msk.f32.mxu1 %vm539_vm2, %v1042_v6 }
 0x23c   : > { %v1046_v12 = vpop.trf.xlu0 }
 0x23d   : > { %1713 = vmatmul.mubr.msk.f32.vlgmr.msra.gmra.mrb[14].mxu1 %vm539_vm2, %v1043_v7 }
 0x23e   : > { %1715 = vmatprep.mubr.msk.f32.mxu1 %vm539_vm2, %v1044_v9 }
 0x240   : > { %v1047_v13 = vpop.trf.xlu0 }
 0x241   : > { %1716 = vmatmul.mubr.msk.f32.gmra.mrb[16].mxu1 %vm539_vm2, %v1045_v11 }
 0x242   : > { %1718 = vmatprep.mubr.msk.f32.mxu1 %vm539_vm2, %v1046_v12 }
 0x244   : > { %v1048_v14 = vpop.trf.xlu0 }
 0x245   : > { %1719 = vmatmul.mubr.msk.f32.gmra.mrb[18].mxu1 %vm539_vm2, %v1047_v13 }
 0x246   : > { %1721 = vmatprep.mubr.msk.f32.mxu1 %vm539_vm2, %v1048_v14 }
 0x248   : > { %v1049_v15 = vpop.trf.xlu0 }
 0x249   : > { %1722 = vmatmul.mubr.msk.f32.gmra.mrb[20].mxu1 %vm539_vm2, %v1049_v15 }
 0x2e4   : > { %v2575_v16 = vpop.f32.mrb[6].mxu0 }
 0x2e5   : > { %v2577_v17 = vpop.f32.mrb[7].mxu0  ;;  %v672_v18 = vsel %vm498_vm1, %v2575_v16, -inf }
 0x2e6   : > { %673 = vmax.xlane.f32.xlu0 %v672_v18  ;;  %v669_v19 = vsel %vm498_vm1, %v2577_v17, -inf }
 0x2e7   : > { %670 = vmax.xlane.f32.xlu1 %v669_v19 }
 0x2ec   : > { %v2583_v20 = vpop.f32.mrb[0].mxu1 }
 0x2ed   : > { %v2585_v21 = vpop.f32.mrb[1].mxu1  ;;  %v678_v22 = vsel %vm498_vm1, %v2583_v20, -inf }
 0x2ee   : > { %679 = vmax.xlane.f32.xlu1 %v678_v22  ;;  %v675_v23 = vsel %vm498_vm1, %v2585_v21, -inf }
 0x2f2   : > { %676 = vmax.xlane.f32.xlu1 %v675_v23 }
 0x2f4   : > { %v2591_v24 = vpop.f32.mrb[2].mxu1 }
 0x2f5   : > { %v2593_v25 = vpop.f32.mrb[3].mxu1  ;;  %v684_v26 = vsel %vm498_vm1, %v2591_v24, -inf }
 0x2f6   : > { %685 = vmax.xlane.f32.xlu1 %v684_v26  ;;  %v681_v27 = vsel %vm498_vm1, %v2593_v25, -inf }
 0x2f7   : > { %682 = vmax.xlane.f32.xlu0 %v681_v27 }
 0x2fc   : > { %v2599_v28 = vpop.f32.mrb[4].mxu1 }
 0x2fd   : > { %v2601_v29 = vpop.f32.mrb[5].mxu1  ;;  %v690_v30 = vsel %vm498_vm1, %v2599_v28, -inf }
 0x2fe   : > { %691 = vmax.xlane.f32.xlu1 %v690_v30  ;;  %v687_v31 = vsel %vm498_vm1, %v2601_v29, -inf }
 0x2ff   : > { %688 = vmax.xlane.f32.xlu0 %v687_v31 }
 0x300   : > { %v2607_v32 = vpop.f32.mrb[6].mxu1 }
 0x301   : > { %v2609_v33 = vpop.f32.mrb[7].mxu1  ;;  %v931_v34 = vsel %vm498_vm1, %v2607_v32, -inf }
 0x302   : > { %932 = vmax.xlane.f32.xlu1 %v931_v34  ;;  %v928_v37 = vsel %vm498_vm1, %v2609_v33, -inf }
 0x304   : > { %v2613_v35 = vpop.f32.mrb[8].mxu1 }
 0x305   : > { %v2615_v36 = vpop.f32.mrb[9].mxu1  ;;  %v937_v40 = vsel %vm498_vm1, %v2613_v35, -inf }
 0x306   : > { %929 = vmax.xlane.f32.xlu1 %v928_v37  ;;  %v934_v44 = vsel %vm498_vm1, %v2615_v36, -inf }
 0x308   : > { %v2619_v38 = vpop.f32.mrb[10].mxu1 }
 0x309   : > { %v2621_v39 = vpop.f32.mrb[11].mxu1  ;;  %v943_v48 = vsel %vm498_vm1, %v2619_v38, -inf }
 0x30a   : > { %938 = vmax.xlane.f32.xlu1 %v937_v40  ;;  %v940_v41 = vsel %vm498_vm1, %v2621_v39, -inf }
 0x30b   : > { %941 = vmax.xlane.f32.xlu0 %v940_v41 }
 0x30c   : > { %v2627_v42 = vpop.f32.mrb[12].mxu1 }
 0x30d   : > { %v2629_v43 = vpop.f32.mrb[13].mxu1  ;;  %v949_v50 = vsel %vm498_vm1, %v2627_v42, -inf }
 0x30e   : > { %935 = vmax.xlane.f32.xlu1 %v934_v44  ;;  %v946_v45 = vsel %vm498_vm1, %v2629_v43, -inf }
 0x30f   : > { %947 = vmax.xlane.f32.xlu0 %v946_v45 }
 0x310   : > { %v2635_v46 = vpop.f32.mrb[14].mxu1 }
 0x311   : > { %v2637_v47 = vpop.f32.mrb[15].mxu1  ;;  %v1190_v56 = vsel %vm498_vm1, %v2635_v46, -inf }
 0x312   : > { %944 = vmax.xlane.f32.xlu1 %v943_v48  ;;  %v1187_v49 = vsel %vm498_vm1, %v2637_v47, -inf }
 0x313   : > { %1188 = vmax.xlane.f32.xlu0 %v1187_v49 }
 0x314   : > { %v2645_v51 = vpop.f32.mrb[16].mxu1 }
 0x315   : > { %v2647_v52 = vpop.f32.mrb[17].mxu1  ;;  %v1196_v60 = vsel %vm498_vm1, %v2645_v51, -inf }
 0x316   : > { %950 = vmax.xlane.f32.xlu1 %v949_v50  ;;  %v1193_v53 = vsel %vm498_vm1, %v2647_v52, -inf }
 0x317   : > { %1194 = vmax.xlane.f32.xlu0 %v1193_v53 }
 0x318   : > { %v2651_v54 = vpop.f32.mrb[18].mxu1 }
 0x319   : > { %v2653_v55 = vpop.f32.mrb[19].mxu1  ;;  %v1202_v62 = vsel %vm498_vm1, %v2651_v54, -inf }
 0x31a   : > { %1191 = vmax.xlane.f32.xlu1 %v1190_v56  ;;  %v1199_v57 = vsel %vm498_vm1, %v2653_v55, -inf }
 0x31b   : > { %1200 = vmax.xlane.f32.xlu0 %v1199_v57 }
 0x31c   : > { %v2659_v58 = vpop.f32.mrb[20].mxu1 }
 0x31d   : > { %v2661_v59 = vpop.f32.mrb[21].mxu1  ;;  %v1208_v63 = vsel %vm498_vm1, %v2659_v58, -inf }
 0x31e   : > { %1197 = vmax.xlane.f32.xlu1 %v1196_v60  ;;  %v1205_v61 = vsel %vm498_vm1, %v2661_v59, -inf }
 0x31f   : > { %1206 = vmax.xlane.f32.xlu0 %v1205_v61 }
 0x322   : > { %1203 = vmax.xlane.f32.xlu1 %v1202_v62 }
 0x326   : > { %1209 = vmax.xlane.f32.xlu1 %v1208_v63 }
 0x373   : > { %v674_v0 = vpop.xlane.xlu0 %673 }
 0x374   : > { %v694_v1 = vsub.f32 %v2575_v16, %v674_v0  ;;  %v671_v2 = vpop.xlane.xlu1 %670 }
 0x375   : > { %v693_v3 = vsub.f32 %v2577_v17, %v671_v2 }
 0x376   : > { %v703_v4 = vmul.f32 1.442695, %v694_v1 }
 0x377   : > { %v701_v5 = vmul.f32 1.442695, %v693_v3 }
 0x378   : > { %1888 = vpow2.f32 %v703_v4 }
 0x379   : > { %1890 = vpow2.f32 %v701_v5 }
 0x37b   : > { %v680_v6 = vpop.xlane.xlu1 %679 }
 0x37c   : > { %v696_v7 = vsub.f32 %v2583_v20, %v680_v6 }
 0x37e   : > { %v707_v8 = vmul.f32 1.442695, %v696_v7 }
 0x37f   : > { %v677_v9 = vpop.xlane.xlu1 %676 }
 0x380   : > { %1892 = vpow2.f32 %v707_v8  ;;  %v695_v10 = vsub.f32 %v2585_v21, %v677_v9 }
 0x382   : > { %v2675_v11 = vpop.eup %1888  ;;  %v705_v12 = vmul.f32 1.442695, %v695_v10 }
 0x383   : > { %v2677_v13 = vpop.eup %1890  ;;  %v686_v14 = vpop.xlane.xlu1 %685  ;;  %v720_v15 = vsel %vm498_vm1, %v2675_v11, 0.0 }
 0x384   : > { %1894 = vpow2.f32 %v705_v12  ;;  %v698_v16 = vsub.f32 %v2591_v24, %v686_v14  ;;  %721 = vadd.xlane.f32.xlu1 %v720_v15  ;;  %v683_v17 = vpop.xlane.xlu0 %682  ;;  %v717_v18 = vsel %vm498_vm1, %v2677_v13, 0.0 }
 0x385   : > { %v697_v19 = vsub.f32 %v2593_v25, %v683_v17  ;;  %718 = vadd.xlane.f32.xlu0 %v717_v18 }
 0x386   : > { %v711_v20 = vmul.f32 1.442695, %v698_v16 }
 0x387   : > { %v709_v21 = vmul.f32 1.442695, %v697_v19 }
 0x388   : > { %1896 = vpow2.f32 %v711_v20 }
 0x389   : > { %1898 = vpow2.f32 %v709_v21 }
 0x38a   : > { %v2685_v22 = vpop.eup %1892 }
 0x38b   : > { %v692_v23 = vpop.xlane.xlu1 %691  ;;  %v726_v26 = vsel %vm498_vm1, %v2685_v22, 0.0 }
 0x38c   : > { %v700_v24 = vsub.f32 %v2599_v28, %v692_v23  ;;  %727 = vadd.xlane.f32.xlu1 %v726_v26  ;;  %v689_v27 = vpop.xlane.xlu0 %688 }
 0x38d   : > { %v699_v30 = vsub.f32 %v2601_v29, %v689_v27 }
 0x38e   : > { %v2691_v31 = vpop.eup %1894  ;;  %v715_v25 = vmul.f32 1.442695, %v700_v24 }
 0x38f   : > { %v713_v34 = vmul.f32 1.442695, %v699_v30  ;;  %v933_v37 = vpop.xlane.xlu1 %932  ;;  %v723_v40 = vsel %vm498_vm1, %v2691_v31, 0.0 }
 0x390   : > { %1900 = vpow2.f32 %v715_v25  ;;  %v953_v41 = vsub.f32 %v2607_v32, %v933_v37  ;;  %724 = vadd.xlane.f32.xlu0 %v723_v40 }
 0x391   : > { %1902 = vpow2.f32 %v713_v34 }
 0x392   : > { %v2696_v44 = vpop.eup %1896  ;;  %v962_v28 = vmul.f32 1.442695, %v953_v41 }
 0x393   : > { %v2698_v45 = vpop.eup %1898  ;;  %v930_v48 = vpop.xlane.xlu1 %929  ;;  %v732_v29 = vsel %vm498_vm1, %v2696_v44, 0.0 }
 0x394   : > { %1904 = vpow2.f32 %v962_v28  ;;  %v952_v49 = vsub.f32 %v2609_v33, %v930_v48  ;;  %733 = vadd.xlane.f32.xlu1 %v732_v29  ;;  %v729_v50 = vsel %vm498_vm1, %v2698_v45, 0.0 }
 0x395   : > { %730 = vadd.xlane.f32.xlu0 %v729_v50 }
 0x396   : > { %v960_v32 = vmul.f32 1.442695, %v952_v49 }
 0x397   : > { %v939_v53 = vpop.xlane.xlu1 %938 }
 0x398   : > { %1906 = vpow2.f32 %v960_v32  ;;  %v955_v56 = vsub.f32 %v2613_v35, %v939_v53  ;;  %v942_v57 = vpop.xlane.xlu0 %941 }
 0x399   : > { %v956_v62 = vsub.f32 %v2621_v39, %v942_v57 }
 0x39a   : > { %v2706_v60 = vpop.eup %1900  ;;  %v966_v61 = vmul.f32 1.442695, %v955_v56 }
 0x39b   : > { %v2709_v63 = vpop.eup %1902  ;;  %v936_v0 = vpop.xlane.xlu1 %935  ;;  %v738_v33 = vsel %vm498_vm1, %v2706_v60, 0.0  ;;  %v968_v4 = vmul.f32 1.442695, %v956_v62 }
 0x39c   : > { %1908 = vpow2.f32 %v966_v61  ;;  %v954_v1 = vsub.f32 %v2615_v36, %v936_v0  ;;  %739 = vadd.xlane.f32.xlu1 %v738_v33  ;;  %v948_v2 = vpop.xlane.xlu0 %947  ;;  %v735_v35 = vsel %vm498_vm1, %v2709_v63, 0.0 }
 0x39d   : > { %736 = vadd.xlane.f32.xlu0 %v735_v35  ;;  %v958_v39 = vsub.f32 %v2629_v43, %v948_v2 }
 0x39e   : > { %v2716_v3 = vpop.eup %1904  ;;  %v964_v5 = vmul.f32 1.442695, %v954_v1 }
 0x39f   : > { %v945_v6 = vpop.xlane.xlu1 %944  ;;  %v979_v7 = vsel %vm498_vm1, %v2716_v3, 0.0  ;;  %v972_v10 = vmul.f32 1.442695, %v958_v39 }
 0x3a0   : > { %1910 = vpow2.f32 %v964_v5  ;;  %v957_v8 = vsub.f32 %v2619_v38, %v945_v6  ;;  %980 = vadd.xlane.f32.xlu1 %v979_v7  ;;  %v1189_v36 = vpop.xlane.xlu0 %1188 }
 0x3a1   : > { %1912 = vpow2.f32 %v968_v4  ;;  %v1211_v14 = vsub.f32 %v2637_v47, %v1189_v36 }
 0x3a2   : > { %v2722_v9 = vpop.eup %1906  ;;  %v970_v12 = vmul.f32 1.442695, %v957_v8 }
 0x3a3   : > { %v951_v15 = vpop.xlane.xlu1 %950  ;;  %v976_v43 = vsel %vm498_vm1, %v2722_v9, 0.0  ;;  %v1219_v38 = vmul.f32 1.442695, %v1211_v14 }
 0x3a4   : > { %1914 = vpow2.f32 %v970_v12  ;;  %v959_v16 = vsub.f32 %v2627_v42, %v951_v15  ;;  %977 = vadd.xlane.f32.xlu0 %v976_v43  ;;  %v1195_v17 = vpop.xlane.xlu0 %1194 }
 0x3a5   : > { %1916 = vpow2.f32 %v972_v10  ;;  %v1213_v20 = vsub.f32 %v2647_v52, %v1195_v17 }
 0x3a6   : > { %v2728_v18 = vpop.eup %1908  ;;  %v974_v19 = vmul.f32 1.442695, %v959_v16 }
 0x3a7   : > { %v1192_v21 = vpop.xlane.xlu1 %1191  ;;  %v985_v47 = vsel %vm498_vm1, %v2728_v18, 0.0  ;;  %v1223_v42 = vmul.f32 1.442695, %v1213_v20 }
 0x3a8   : > { %1918 = vpow2.f32 %v974_v19  ;;  %v1212_v23 = vsub.f32 %v2635_v46, %v1192_v21  ;;  %986 = vadd.xlane.f32.xlu1 %v985_v47  ;;  %v1201_v26 = vpop.xlane.xlu0 %1200 }
 0x3a9   : > { %1920 = vpow2.f32 %v1219_v38  ;;  %v1215_v30 = vsub.f32 %v2653_v55, %v1201_v26 }
 0x3aa   : > { %v2734_v24 = vpop.eup %1910  ;;  %v1221_v27 = vmul.f32 1.442695, %v1212_v23 }
 0x3ab   : > { %v1198_v25 = vpop.xlane.xlu1 %1197  ;;  %v982_v52 = vsel %vm498_vm1, %v2734_v24, 0.0  ;;  %v2739_v34 = vpop.eup %1912  ;;  %v1227_v41 = vmul.f32 1.442695, %v1215_v30 }
 0x3ac   : > { %1922 = vpow2.f32 %v1221_v27  ;;  %v1214_v37 = vsub.f32 %v2645_v51, %v1198_v25  ;;  %983 = vadd.xlane.f32.xlu0 %v982_v52  ;;  %v1207_v46 = vpop.xlane.xlu0 %1206  ;;  %v988_v49 = vsel %vm498_vm1, %v2739_v34, 0.0 }
 0x3ad   : > { %1924 = vpow2.f32 %v1223_v42  ;;  %v1217_v48 = vsub.f32 %v2661_v59, %v1207_v46 }
 0x3ae   : > { %v2742_v40 = vpop.eup %1914  ;;  %v1225_v28 = vmul.f32 1.442695, %v1214_v37 }
 0x3af   : > { %v1204_v29 = vpop.xlane.xlu1 %1203  ;;  %v991_v55 = vsel %vm498_vm1, %v2742_v40, 0.0  ;;  %v2749_v50 = vpop.eup %1916  ;;  %v1231_v53 = vmul.f32 1.442695, %v1217_v48 }
 0x3b0   : > { %1926 = vpow2.f32 %v1225_v28  ;;  %v1216_v51 = vsub.f32 %v2651_v54, %v1204_v29  ;;  %992 = vadd.xlane.f32.xlu1 %v991_v55  ;;  %989 = vadd.xlane.f32.xlu0 %v988_v49  ;;  %v994_v61 = vsel %vm498_vm1, %v2749_v50, 0.0 }
 0x3b1   : > { %1928 = vpow2.f32 %v1227_v41 }
 0x3b2   : > { %v2752_v32 = vpop.eup %1918  ;;  %v1229_v56 = vmul.f32 1.442695, %v1216_v51 }
 0x3b3   : > { %v1210_v59 = vpop.xlane.xlu1 %1209  ;;  %v997_v57 = vsel %vm498_vm1, %v2752_v32, 0.0  ;;  %v2758_v62 = vpop.eup %1920 }
 0x3b4   : > { %1930 = vpow2.f32 %v1229_v56  ;;  %v1218_v0 = vsub.f32 %v2659_v58, %v1210_v59  ;;  %998 = vadd.xlane.f32.xlu1 %v997_v57  ;;  %995 = vadd.xlane.f32.xlu0 %v994_v61  ;;  %v1235_v2 = vsel %vm498_vm1, %v2758_v62, 0.0 }
 0x3b5   : > { %1932 = vpow2.f32 %v1231_v53 }
 0x3b6   : > { %v2761_v54 = vpop.eup %1922  ;;  %v1233_v33 = vmul.f32 1.442695, %v1218_v0 }
 0x3b7   : > { %v1238_v1 = vsel %vm498_vm1, %v2761_v54, 0.0  ;;  %v2767_v35 = vpop.eup %1924 }
 0x3b8   : > { %1934 = vpow2.f32 %v1233_v33  ;;  %1239 = vadd.xlane.f32.xlu1 %v1238_v1  ;;  %1236 = vadd.xlane.f32.xlu0 %v1235_v2  ;;  %v1241_v5 = vsel %vm498_vm1, %v2767_v35, 0.0 }
 0x3ba   : > { %v2769_v4 = vpop.eup %1926 }
 0x3bb   : > { %v1244_v58 = vsel %vm498_vm1, %v2769_v4, 0.0  ;;  %v2775_v39 = vpop.eup %1928 }
 0x3bc   : > { %1245 = vadd.xlane.f32.xlu1 %v1244_v58  ;;  %1242 = vadd.xlane.f32.xlu0 %v1241_v5  ;;  %v1247_v8 = vsel %vm498_vm1, %v2775_v39, 0.0 }
 0x3be   : > { %v2777_v6 = vpop.eup %1930 }
 0x3bf   : > { %v1250_v7 = vsel %vm498_vm1, %v2777_v6, 0.0  ;;  %v2783_v36 = vpop.eup %1932 }
 0x3c0   : > { %1251 = vadd.xlane.f32.xlu1 %v1250_v7  ;;  %1248 = vadd.xlane.f32.xlu0 %v1247_v8  ;;  %v1253_v14 = vsel %vm498_vm1, %v2783_v36, 0.0 }
 0x3c2   : > { %v2785_v10 = vpop.eup %1934 }
 0x3c3   : > { %v1256_v12 = vsel %vm498_vm1, %v2785_v10, 0.0 }
 0x3c4   : > { %1257 = vadd.xlane.f32.xlu1 %v1256_v12  ;;  %1254 = vadd.xlane.f32.xlu0 %v1253_v14 }
 0x411   : > { %v722_v15 = vpop.xlane.xlu1 %721 }
 0x412   : > { %1936 = vrcp.f32 %v722_v15  ;;  %v719_v43 = vpop.xlane.xlu0 %718 }
 0x413   : > { %1938 = vrcp.f32 %v719_v43 }
 0x419   : > { %v728_v16 = vpop.xlane.xlu1 %727 }
 0x41a   : > { %1940 = vrcp.f32 %v728_v16 }
 0x41c   : > { %v1937_v17 = vpop.eup %1936 }
 0x41d   : > { %v1939_v38 = vpop.eup %1938  ;;  %v750_v19 = vmul.f32 %v1937_v17, %v2675_v11  ;;  %v725_v20 = vpop.xlane.xlu0 %724 }
 0x41e   : > { %v749_v21 = vmul.f32 %v1939_v38, %v2677_v13  ;;  %1942 = vrcp.f32 %v725_v20 }
 0x41f   : > { %758 = vst.msk [vmem:[%s2797_s24 + $0x8] sm:$0xff] %vm498_vm1, %v750_v19 }
 0x420   : > { %757 = vst.msk [vmem:[%s2797_s24] sm:$0xff] %vm498_vm1, %v749_v21 }
 0x421   : > { %v734_v47 = vpop.xlane.xlu1 %733 }
 0x422   : > { %1944 = vrcp.f32 %v734_v47  ;;  %v731_v23 = vpop.xlane.xlu0 %730 }
 0x423   : > { %1946 = vrcp.f32 %v731_v23 }
 0x424   : > { %v1941_v11 = vpop.eup %1940 }
 0x425   : > { %v752_v13 = vmul.f32 %v1941_v11, %v2685_v22 }
 0x427   : > { %760 = vst.msk [vmem:[%s2797_s24 + $0x18] sm:$0xff] %vm498_vm1, %v752_v13 }
 0x428   : > { %v1943_v26 = vpop.eup %1942 }
 0x429   : > { %v751_v42 = vmul.f32 %v1943_v26, %v2691_v31  ;;  %v740_v27 = vpop.xlane.xlu1 %739 }
 0x42a   : > { %1948 = vrcp.f32 %v740_v27  ;;  %v737_v30 = vpop.xlane.xlu0 %736 }
 0x42b   : > { %759 = vst.msk [vmem:[%s2797_s24 + $0x10] sm:$0xff] %vm498_vm1, %v751_v42  ;;  %1950 = vrcp.f32 %v737_v30 }
 0x42c   : > { %v1945_v25 = vpop.eup %1944 }
 0x42d   : > { %v1947_v52 = vpop.eup %1946  ;;  %v754_v22 = vmul.f32 %v1945_v25, %v2696_v44  ;;  %v981_v37 = vpop.xlane.xlu1 %980 }
 0x42e   : > { %v753_v31 = vmul.f32 %v1947_v52, %v2698_v45  ;;  %1952 = vrcp.f32 %v981_v37 }
 0x42f   : > { %762 = vst.msk [vmem:[%s2797_s24 + $0x28] sm:$0xff] %vm498_vm1, %v754_v22 }
 0x430   : > { %761 = vst.msk [vmem:[%s2797_s24 + $0x20] sm:$0xff] %vm498_vm1, %v753_v31 }
 0x431   : > { %v978_v46 = vpop.xlane.xlu0 %977 }
 0x432   : > { %1954 = vrcp.f32 %v978_v46 }
 0x434   : > { %v1949_v44 = vpop.eup %1948 }
 0x435   : > { %v1951_v41 = vpop.eup %1950  ;;  %v756_v45 = vmul.f32 %v1949_v44, %v2706_v60  ;;  %v987_v28 = vpop.xlane.xlu1 %986 }
 0x436   : > { %v755_v48 = vmul.f32 %v1951_v41, %v2709_v63  ;;  %1956 = vrcp.f32 %v987_v28 }
 0x437   : > { %764 = vst.msk [vmem:[%s2797_s24 + $0x38] sm:$0xff] %vm498_vm1, %v756_v45 }
 0x438   : > { %v1953_v29 = vpop.eup %1952  ;;  %763 = vst.msk [vmem:[%s2797_s24 + $0x30] sm:$0xff] %vm498_vm1, %v755_v48 }
 0x439   : > { %v1009_v60 = vmul.f32 %v1953_v29, %v2716_v3  ;;  %v984_v55 = vpop.xlane.xlu0 %983 }
 0x43a   : > { %2083 = shalt.err (!%p2080_p1)
}
 0x43b   : > { %s2084_s18 = scalar_lea.hbm %s2827_s10, 1024  ;;  %s2088_s7 = scalar_lea.hbm %s3069_s6, 8192 }
 0x43c   : > { %p2085_p2 = scmp.ne.s32.totalorder %s2827_s10, %s2084_s18  ;;  %p2089_p12 = scmp.lt.u32.totalorder %s2827_s10, %s3069_s6 }
 0x43d   : > { %p2090_p0 = scmp.lt.u32.totalorder %s2088_s7, %s2084_s18  ;;  %p2092_p8 = scmp.lt.u32.totalorder %s2084_s18, %s2827_s10 }
 0x43e   : > { %p2086_p4 = pnand %p2085_p2, %p2444_p6 }
 0x43f   : > { %p2091_p10 = por %p2090_p0, %p2089_p12 }
 0x440   : > { %p2087_p7 = pneg %p2086_p4 }
 0x441   : > { %p2093_p11 = por %p2092_p8, %p2091_p10 }
 0x443   : > { %p2094_p13 = pnand %p2093_p11, %p2087_p7 }
 0x445   : > { %2097 = shalt.err (!%p2094_p13)
}
 0x446   : > { %s2257_s1 = smov 128   ;;  %s2258_s2 = smov 8   ;;  %1958 = vrcp.f32 %v984_v55  ;;  %v1955_v63 = vpop.eup %1954  ;;  %v993_v49 = vpop.xlane.xlu1 %992 }
 0x447   : > { %1765 = dma.vmem_to_hbm [thread:$0]  (%p2444_p6), %s2829_s22, 1024, %s2827_s10, %s1284_s15, %s2257_s1, %s2257_s1, %s2258_s2   ;;  %v1008_v3 = vmul.f32 %v1955_v63, %v2722_v9  ;;  %v990_v51 = vpop.xlane.xlu0 %989  ;;  %1960 = vrcp.f32 %v993_v49  ;;  %v1957_v53 = vpop.eup %1956 }
 0x448   : > { %s2864_s21 = scalar_lea.vmem [#allocation10], %s2792_s4  ;;  %1962 = vrcp.f32 %v990_v51  ;;  %v1011_v56 = vmul.f32 %v1957_v53, %v2728_v18  ;;  %s1288_s8 = sand.u32 1, %s2342_s28  }
 0x449   : > { %1017 = vst.msk [vmem:[%s2864_s21 + $0x8] sm:$0xff] %vm498_vm1, %v1009_v60  ;;  %1016 = vst.msk [vmem:[%s2864_s21] sm:$0xff] %vm498_vm1, %v1008_v3  ;;  %s1331_s22 = sshll.u32 %s2864_s21, 4  ;;  %s3070_s28 = sld [smem:[#allocation29_spill]]  ;;  %s2893_s22 = int_to_ptr.vmem [resolvable:$true] %s1331_s22 }
 0x44a   : > { %v999_v59 = vpop.xlane.xlu1 %998  ;;  %1019 = vst.msk [vmem:[%s2864_s21 + $0x18] sm:$0xff] %vm498_vm1, %v1011_v56  ;;  %s2900_s15 = scalar_lea.sflag [#allocation11], %s1288_s8  ;;  %s2098_s16 = scalar_lea.vmem %s2893_s22, 1024 }
 0x44b   : > { %v996_v57 = vpop.xlane.xlu0 %995  ;;  %1964 = vrcp.f32 %v999_v59  ;;  %p2099_p3 = scmp.ne.s32.totalorder %s2893_s22, %s2098_s16  ;;  %s2259_s17 = smov [#allocation10]  }
 0x44c   : > { %1966 = vrcp.f32 %v996_v57  ;;  %s2102_s11 = sshll.u32 %s2259_s17, 4  ;;  %s2103_s11 = int_to_ptr.vmem [resolvable:$false] %s2102_s11 }
 0x44d   : > { %p2100_p5 = pnand %p2099_p3, %p2444_p6  ;;  %s2104_s5 = scalar_lea.vmem %s2103_s11, 2048 }
 0x44e   : > { %v1240_v0 = vpop.xlane.xlu1 %1239  ;;  %p2105_p1 = scmp.lt.s32.totalorder %s2893_s22, %s2103_s11  ;;  %p2106_p2 = scmp.lt.s32.totalorder %s2104_s5, %s2098_s16 }
 0x44f   : > { %v1237_v33 = vpop.xlane.xlu0 %1236  ;;  %1968 = vrcp.f32 %v1240_v0  ;;  %s2891_s10 = scalar_lea.hbm %s3070_s28, %s2818_s3  ;;  %p2101_p9 = pneg %p2100_p5 }
 0x450   : > { %v1959_v61 = vpop.eup %1958  ;;  %1970 = vrcp.f32 %v1237_v33  ;;  %p2107_p4 = por %p2106_p2, %p2105_p1 }
 0x451   : > { %v1010_v9 = vmul.f32 %v1959_v61, %v2734_v24  ;;  %v1961_v18 = vpop.eup %1960 }
 0x452   : > { %v1963_v1 = vpop.eup %1962  ;;  %v1013_v2 = vmul.f32 %v1961_v18, %v2742_v40  ;;  %v1246_v58 = vpop.xlane.xlu1 %1245  ;;  %p2108_p7 = pnand %p2107_p4, %p2101_p9 }
 0x453   : > { %1018 = vst.msk [vmem:[%s2864_s21 + $0x10] sm:$0xff] %vm498_vm1, %v1010_v9  ;;  %v1243_v5 = vpop.xlane.xlu0 %1242  ;;  %v1012_v7 = vmul.f32 %v1963_v1, %v2739_v34  ;;  %1972 = vrcp.f32 %v1246_v58 }
 0x454   : > { %1021 = vst.msk [vmem:[%s2864_s21 + $0x28] sm:$0xff] %vm498_vm1, %v1013_v2  ;;  %1974 = vrcp.f32 %v1243_v5 }
 0x455   : > { %v1965_v24 = vpop.eup %1964  ;;  %1020 = vst.msk [vmem:[%s2864_s21 + $0x20] sm:$0xff] %vm498_vm1, %v1012_v7 }
 0x456   : > { %v1967_v8 = vpop.eup %1966  ;;  %v1015_v12 = vmul.f32 %v1965_v24, %v2752_v32  ;;  %v1252_v40 = vpop.xlane.xlu1 %1251 }
 0x457   : > { %v1249_v14 = vpop.xlane.xlu0 %1248  ;;  %v1014_v15 = vmul.f32 %v1967_v8, %v2749_v50  ;;  %1976 = vrcp.f32 %v1252_v40 }
 0x458   : > { %1023 = vst.msk [vmem:[%s2864_s21 + $0x38] sm:$0xff] %vm498_vm1, %v1015_v12  ;;  %1978 = vrcp.f32 %v1249_v14 }
 0x459   : > { %v1969_v34 = vpop.eup %1968  ;;  %1022 = vst.msk [vmem:[%s2864_s21 + $0x30] sm:$0xff] %vm498_vm1, %v1014_v15 }
 0x45a   : > { %v1971_v32 = vpop.eup %1970  ;;  %v1268_v50 = vmul.f32 %v1969_v34, %v2761_v54  ;;  %v1258_v43 = vpop.xlane.xlu1 %1257 }
 0x45b   : > { %v1255_v16 = vpop.xlane.xlu0 %1254 }
 0x45c   : > { %2111 = shalt.err (!%p2108_p7)
}
 0x45d   : > { %s2112_s18 = scalar_lea.hbm %s2891_s10, 1024  ;;  %s2116_s7 = scalar_lea.hbm %s3070_s28, 8192 }
 0x45e   : > { %p2113_p12 = scmp.ne.s32.totalorder %s2891_s10, %s2112_s18  ;;  %p2117_p8 = scmp.lt.u32.totalorder %s2891_s10, %s3070_s28 }
 0x45f   : > { %p2118_p11 = scmp.lt.u32.totalorder %s2116_s7, %s2112_s18  ;;  %p2120_p3 = scmp.lt.u32.totalorder %s2112_s18, %s2891_s10 }
 0x460   : > { %p2114_p0 = pnand %p2113_p12, %p2444_p6 }
 0x461   : > { %p2119_p13 = por %p2118_p11, %p2117_p8 }
 0x462   : > { %p2115_p10 = pneg %p2114_p0 }
 0x463   : > { %p2121_p5 = por %p2120_p3, %p2119_p13 }
 0x465   : > { %p2122_p9 = pnand %p2121_p5, %p2115_p10 }
 0x467   : > { %2125 = shalt.err (!%p2122_p9)
}
 0x468   : > { %1766 = dma.vmem_to_hbm [thread:$0]  (%p2444_p6), %s2893_s22, 1024, %s2891_s10, %s2900_s15, %s2257_s1, %s2257_s1, %s2258_s2   ;;  %v1267_v54 = vmul.f32 %v1971_v32, %v2758_v62  ;;  %1980 = vrcp.f32 %v1258_v43  ;;  %v1973_v17 = vpop.eup %1972 }
 0x469   : > { %s328_s21 = scalar_lea.vmem [#allocation12], %s2792_s4  ;;  %1982 = vrcp.f32 %v1255_v16  ;;  %v1975_v38 = vpop.eup %1974  ;;  %v1270_v19 = vmul.f32 %v1973_v17, %v2769_v4  ;;  %s3071_s27 = sld [smem:[#allocation30_spill]] }
 0x46a   : > { %1276 = vst.msk [vmem:[%s328_s21 + $0x8] sm:$0xff] %vm498_vm1, %v1268_v50  ;;  %1275 = vst.msk [vmem:[%s328_s21] sm:$0xff] %vm498_vm1, %v1267_v54  ;;  %v1269_v20 = vmul.f32 %v1975_v38, %v2767_v35  ;;  %v1977_v21 = vpop.eup %1976  ;;  %s1351_s4 = sshll.u32 %s328_s21, 4  ;;  %s2260_s17 = smov [#allocation12]   ;;  %s2947_s4 = int_to_ptr.vmem [resolvable:$true] %s1351_s4 }
 0x46b   : > { %1278 = vst.msk [vmem:[%s328_s21 + $0x18] sm:$0xff] %vm498_vm1, %v1270_v19  ;;  %v1979_v62 = vpop.eup %1978  ;;  %v1272_v47 = vmul.f32 %v1977_v21, %v2777_v6  ;;  %s2126_s16 = scalar_lea.vmem %s2947_s4, 1024  ;;  %s2130_s11 = sshll.u32 %s2260_s17, 4  ;;  %s2131_s11 = int_to_ptr.vmem [resolvable:$false] %s2130_s11 }
 0x46c   : > { %1277 = vst.msk [vmem:[%s328_s21 + $0x10] sm:$0xff] %vm498_vm1, %v1269_v20  ;;  %v1271_v23 = vmul.f32 %v1979_v62, %v2775_v39  ;;  %p2127_p1 = scmp.ne.s32.totalorder %s2947_s4, %s2126_s16  ;;  %s2132_s5 = scalar_lea.vmem %s2131_s11, 2048 }
 0x46d   : > { %1280 = vst.msk [vmem:[%s328_s21 + $0x28] sm:$0xff] %vm498_vm1, %v1272_v47  ;;  %p2133_p7 = scmp.lt.s32.totalorder %s2947_s4, %s2131_s11  ;;  %p2134_p12 = scmp.lt.s32.totalorder %s2132_s5, %s2126_s16 }
 0x46e   : > { %1279 = vst.msk [vmem:[%s328_s21 + $0x20] sm:$0xff] %vm498_vm1, %v1271_v23  ;;  %p2128_p2 = pnand %p2127_p1, %p2444_p6 }
 0x46f   : > { %s3072_s14 = smov %s3071_s27  ;;  %s2945_s10 = scalar_lea.hbm %s3071_s27, %s2818_s3 }
 0x470   : > { %p2129_p4 = pneg %p2128_p2  ;;  %p2135_p0 = por %p2134_p12, %p2133_p7 }
 0x472   : > { %v1981_v11 = vpop.eup %1980  ;;  %p2136_p10 = pnand %p2135_p0, %p2129_p4 }
 0x473   : > { %v1983_v4 = vpop.eup %1982  ;;  %v1274_v35 = vmul.f32 %v1981_v11, %v2785_v10 }
 0x474   : > { %v1273_v13 = vmul.f32 %v1983_v4, %v2783_v36 }
 0x475   : > { %1282 = vst.msk [vmem:[%s328_s21 + $0x38] sm:$0xff] %vm498_vm1, %v1274_v35 }
 0x476   : > { %1281 = vst.msk [vmem:[%s328_s21 + $0x30] sm:$0xff] %vm498_vm1, %v1273_v13 }
 0x477   : > { %2139 = shalt.err (!%p2136_p10)
}
 0x478   : > { %s2140_s3 = scalar_lea.hbm %s2945_s10, 1024  ;;  %s2144_s30 = scalar_lea.hbm %s3072_s14, 8192 }
 0x479   : > { %p2141_p8 = scmp.ne.s32.totalorder %s2945_s10, %s2140_s3  ;;  %p2145_p3 = scmp.lt.u32.totalorder %s2945_s10, %s3072_s14 }
 0x47a   : > { %p2146_p5 = scmp.lt.u32.totalorder %s2144_s30, %s2140_s3  ;;  %p2148_p1 = scmp.lt.u32.totalorder %s2140_s3, %s2945_s10 }
 0x47b   : > { %p2142_p11 = pnand %p2141_p8, %p2444_p6 }
 0x47c   : > { %p2147_p9 = por %p2146_p5, %p2145_p3 }
 0x47d   : > { %p2143_p13 = pneg %p2142_p11 }
 0x47e   : > { %p2149_p2 = por %p2148_p1, %p2147_p9 }
 0x480   : > { %p2150_p4 = pnand %p2149_p2, %p2143_p13 }
 0x482   : > { %2153 = shalt.err (!%p2150_p4)
}
 0x483   : > { %1767 = dma.vmem_to_hbm [thread:$0]  (%p2444_p6), %s2947_s4, 1024, %s2945_s10, %s2900_s15, %s2257_s1, %s2257_s1, %s2258_s2  }
 0x484 PF: > { %s3073_s13 = sld [smem:[#allocation21_spill]]  ;;  %s3074_s21 = sld [smem:[#allocation17_spill]] }
 0x485   : > { %s3075_s8 = sld [smem:[#allocation22_spill]] }
 0x48a   : > { %p1797_p7 = scmp.ge.s32.totalorder %s3073_s13, 2  ;;  %s1366_s22 = sand.u32 1, %s3074_s21  }
 0x48b   : > { %p3076_p12 = scmp.ne.s32.totalorder %s3075_s8, 0  ;;  %s1367_s27 = scalar_lea.sflag [#allocation5], %s1366_s22 }
 0x48d   : > { %p1783_p0 = pnand %p1797_p7, %p3076_p12 }
 0x48f   : > { %2203 = dma.done.wait (!%p1783_p0), %s1367_s27, 1024  }
 0x490   : > { %2205 = vsyncadd (!%p1783_p0), %s1367_s27, 4294966272  ;;  %s3077_s23 = sadd.s32 4294967294, %s3073_s13  }
 0x491   : > { %s1375_s16 = sand.u32 1, %s3077_s23  }
 0x492   : > { %s1376_s17 = scalar_lea.sflag [#allocation11], %s1375_s16 }
 0x493   : > { %2207 = dma.done.wait (!%p1783_p0), %s1376_s17, 2048  }
 0x494   : > { %2209 = vsyncadd (!%p1783_p0), %s1376_s17, 4294965248  ;;  %s26_s27 = sadd.s32 1, %s3073_s13   ;;  %s3078_s21 = sld [smem:[#allocation20_spill]] }
 0x495   : > { %p23_p6 = scmp.ge.s32.totalorder %s26_s27, 10   ;;  %s3079_s24 = sld [smem:[#allocation23_spill]] }
 0x496   : > { %s3080_s1 = sld [smem:[#allocation25_spill]]  ;;  %s3081_s18 = smov %s2216_s19 }
 0x497   : > { %s3082_s19 = smov %s2220_s20  ;;  %s3083_s20 = smov %s2469_s12 }
 0x498   : > { %s3084_s22 = smov %s2240_s25  ;;  %s3085_s23 = smov %s2244_s26 }
 0x499   : > { %s3087_s26 = smov %s3097_s29  ;;  %25 = sbr.rel (!%p23_p6) target bundleno = 17 (0x11), region = 117 }
 0x49c   : > { %s3086_s25 = smov %s3080_s1 }
 0x4a0   :  { %1390 = vsyncpa [#allocation4], 1 }
 0x4a1   :  { %1392 = vsyncpa [#allocation4 + $0x1], 1 }
 0x4a2   :  { %1393 = vsyncpa [#allocation7], 1 }
 0x4a3   :  { %1394 = vsyncpa [#allocation5], 1 }
 0x4a4   :  { %1396 = vsyncpa [#allocation5 + $0x1], 1 }
 0x4a5   :  { %1397 = vsyncpa [#allocation11], 1 }
 0x4a6   :  { %1399 = vsyncpa [#allocation11 + $0x1], 1 }

</bundles_post_ra>
